<compile_context>
chip_gen: v5e
topology: v5e:2x2
jax: 0.10.0
libtpu: 0.0.40
codegen_flags: <defaults>
</compile_context>

<pallas_src>
import functools

import numpy as np
import jax
import jax.numpy as jnp
from jax.experimental import pallas as pl
from jax.experimental.pallas import tpu as pltpu

# Module-level "globals" of the original training script, at small synthetic sizes.
BLOCK_SIZE = (4, 4)            # (bh, bw)
IMG_SIZE = (16, 16)            # (H, W)
NBLOCKS = 32
N_SEQUENCE = 8
BLOCK_LEN = BLOCK_SIZE[0] * BLOCK_SIZE[1]                      # 16
TILES_PER_IMG = (IMG_SIZE[0] * IMG_SIZE[1]) // BLOCK_LEN       # 16
TILES_Y = IMG_SIZE[0] // BLOCK_SIZE[0]
TILES_X = IMG_SIZE[1] // BLOCK_SIZE[1]
HW = IMG_SIZE[0] * IMG_SIZE[1]                                 # 256 (lane-dense row)
MAX_BATCH_TILE = 8                                             # images per grid step


# --------------------------------------------------------------------------
# Compile-time constants (numpy, hoisted out of the kernel).
# --------------------------------------------------------------------------
def _build_constants():
    H, W = IMG_SIZE
    bh, bw = BLOCK_SIZE
    yy, xx = np.meshgrid(np.arange(H), np.arange(W), indexing="ij")

    # tile index t(c) owning flat pixel c = y*W + x  (torch Unfold/Fold ordering)
    t_of_c = ((yy // bh) * TILES_X + (xx // bw)).reshape(-1)                        # [HW]
    sel = (np.arange(TILES_PER_IMG)[:, None] == t_of_c[None, :]).astype(np.float32)  # [T, HW]

    mx = ((xx % bw == 0) | (xx % bw == bw - 1)).astype(np.float32).reshape(-1)      # mask_x per pixel
    my = ((yy % bh == 0) | (yy % bh == bh - 1)).astype(np.float32).reshape(-1)      # mask_y per pixel
    # qty/2 (the trailing /2 of the filter is folded into the constants)
    qty_half = (0.45 * (mx + my)).reshape(1, H * W)

    # Stencil matrix A (un-doubled; the img*2 is also absorbed by the /2 fold):
    #   (v @ A)[c] = v[c] + (v[left]+v[right])/2*mask_x[c] + (v[up]+v[down])/2*mask_y[c]
    # with replicate-pad boundary handling baked in (clamped neighbor indices).
    a = np.zeros((H * W, H * W), np.float32)
    for y in range(H):
        for x in range(W):
            c = y * W + x
            a[c, c] += 1.0
            l = y * W + max(x - 1, 0)
            r = y * W + min(x + 1, W - 1)
            u = max(y - 1, 0) * W + x
            d = min(y + 1, H - 1) * W + x
            a[l, c] += 0.5 * mx[c]
            a[r, c] += 0.5 * mx[c]
            a[u, c] += 0.5 * my[c]
            a[d, c] += 0.5 * my[c]
    return sel, a.astype(np.float32), qty_half.astype(np.float32)


_SEL_NP, _STENCIL_A_NP, _QTY_HALF_NP = _build_constants()


# --------------------------------------------------------------------------
# Elementwise helpers (match torch F.softplus(beta, threshold=20) / soft_clamp)
# --------------------------------------------------------------------------
def _softplus_beta(x, beta, threshold=20.0):
    bx = x * beta
    sp = jnp.log(1.0 + jnp.exp(jnp.minimum(bx, threshold))) / beta
    return jnp.where(bx > threshold, x, sp)


def _soft_clamp(x, lo, hi, hardness):
    return lo + _softplus_beta(x - lo, hardness) - _softplus_beta(x - hi, hardness)


# --------------------------------------------------------------------------
# Fused kernel body: weights -> (reconstruct + fold) matmul -> deblocking filter
# --------------------------------------------------------------------------
def _reconstruct_body(w, m3_ref, a_ref, qtyh_ref, out_ref):
    # g[t, b, c] = sum_n w[t, b, n] * sel[t, c] * blocks_tiled[n, c]   (batched MXU matmul)
    g = jax.lax.dot_general(
        w, m3_ref[...],
        dimension_numbers=(((2,), (1,)), ((0,), (0,))),
        preferred_element_type=jnp.float32)                       # [T, TB, HW]
    # Fold: each pixel is owned by exactly one tile, so the t-sum is a cheap leading-dim add.
    img_raw = jnp.sum(g, axis=0)                                   # [TB, HW]
    # Deblock stencil (replicate pad folded into constant A), img*2 and result/2 folded away:
    #   soft_clamp(2*img_raw@A - qty, 0, 2, 10) / 2 == soft_clamp(img_raw@A - qty/2, 0, 1, 20)
    pre = jnp.dot(img_raw, a_ref[...], preferred_element_type=jnp.float32) - qtyh_ref[...]
    # NOTE: the reference's `where(qty == 1, center, filtered)` is provably dead (qty in
    # {0, 0.9, 1.8}) and is dropped here.
    out_ref[...] = _soft_clamp(pre, 0.0, 1.0, hardness=20.0)       # [TB, HW], lane-dense store


def _eval_kernel(seq_ref, m3_ref, a_ref, qtyh_ref, out_ref):
    # F.one_hot(argmax(z)) -- first-max index, matching torch.argmax
    z = seq_ref[...]                                               # [T, TB, N]
    m = jnp.max(z, axis=-1, keepdims=True)
    col = jax.lax.broadcasted_iota(jnp.int32, z.shape, 2)
    first = jnp.min(jnp.where(z == m, col, NBLOCKS), axis=-1, keepdims=True)
    w = (col == first).astype(jnp.float32)
    _reconstruct_body(w, m3_ref, a_ref, qtyh_ref, out_ref)


def _train_kernel(seq_ref, noise_ref, m3_ref, a_ref, qtyh_ref, out_ref):
    # F.gumbel_softmax(tau=1.0, hard=False) == softmax(logits + gumbel_noise)
    z = seq_ref[...] + noise_ref[...]                              # [T, TB, N]
    m = jnp.max(z, axis=-1, keepdims=True)
    e = jnp.exp(z - m)
    s = jnp.sum(e, axis=-1, keepdims=True)
    w = e * pl.reciprocal(s, approx=True)                          # EUP reciprocal
    _reconstruct_body(w, m3_ref, a_ref, qtyh_ref, out_ref)


# --------------------------------------------------------------------------
# Forward wrapper
# --------------------------------------------------------------------------
@functools.partial(jax.jit, static_argnames=("training",))
def image_reconstruction_forward(frame_idxs, sequence, blocks, *, training=False, rng_key=None):
    B = frame_idxs.shape[0]
    H, W = IMG_SIZE

    # Gather (16 KiB total) done in the wrapper; laid out [T, B, N] so the kernel needs no
    # in-kernel transpose/reshape before the batched matmul.
    seq_g = jnp.transpose(jnp.take(sequence, frame_idxs.astype(jnp.int32), axis=0), (1, 0, 2))

    # Batch tiling: one grid step per tile of up to MAX_BATCH_TILE images ("parallel" -> v7x TCs).
    tb = B if B <= MAX_BATCH_TILE else MAX_BATCH_TILE
    nb = -(-B // tb)
    bp = nb * tb
    if bp != B:
        seq_g = jnp.pad(seq_g, ((0, 0), (0, bp - B), (0, 0)))

    # Fold selector baked into the matmul RHS: M3[t, n, c] = sel[t, c] * blocks_tiled[n, c].
    blocks_big = jnp.tile(blocks, (1, TILES_Y, TILES_X)).reshape(NBLOCKS, HW)       # [N, 256]
    m3 = jnp.asarray(_SEL_NP)[:, None, :] * blocks_big[None, :, :]                  # [T, N, 256]
    stencil = jnp.asarray(_STENCIL_A_NP)                                            # [256, 256]
    qty_half = jnp.asarray(_QTY_HALF_NP)                                            # [1, 256]

    operands = [seq_g]
    in_specs = [pl.BlockSpec((TILES_PER_IMG, tb, NBLOCKS), lambda i: (0, i, 0))]
    if training:
        if rng_key is None:
            raise ValueError("training=True requires rng_key")
        # TODO(synk): torch's gumbel RNG stream is not reproducible; equivalent noise via jax.random.
        noise = jax.random.gumbel(rng_key, seq_g.shape, dtype=jnp.float32)
        operands.append(noise)
        in_specs.append(pl.BlockSpec((TILES_PER_IMG, tb, NBLOCKS), lambda i: (0, i, 0)))
    operands += [m3, stencil, qty_half]
    in_specs += [
        pl.BlockSpec((TILES_PER_IMG, NBLOCKS, HW), lambda i: (0, 0, 0)),   # grid-invariant
        pl.BlockSpec((HW, HW), lambda i: (0, 0)),                          # grid-invariant
        pl.BlockSpec((1, HW), lambda i: (0, 0)),                           # grid-invariant
    ]

    out = pl.pallas_call(
        _train_kernel if training else _eval_kernel,
        out_shape=jax.ShapeDtypeStruct((bp, HW), jnp.float32),
        grid=(nb,),
        in_specs=in_specs,
        out_specs=pl.BlockSpec((tb, HW), lambda i: (i, 0)),
        compiler_params=pltpu.CompilerParams(dimension_semantics=("parallel",)),
    )(*operands)                                                                   # [bp, 256]

    return out[:B].reshape(B, 1, H, W)                                             # NCHW, C = 1


# --------------------------------------------------------------------------
# Pure-JAX reference (mirrors the PyTorch module, eval path) for self-check.
# --------------------------------------------------------------------------
def _torch_softplus(x, beta=10.0, threshold=20.0):
    return jnp.where(x * beta > threshold, x,
                     jnp.log1p(jnp.exp(jnp.minimum(x * beta, threshold))) / beta)


def _deblocking_filter_ref(img_raw):
    bh, bw = BLOCK_SIZE
    img = img_raw * 2
    _, _, H, W = img.shape
    xs = jnp.arange(W)
    ys = jnp.arange(H)
    mask_x = (((xs % bw) == 0) | ((xs % bw) == bw - 1)).astype(img.dtype).reshape(1, 1, 1, W)
    mask_y = (((ys % bh) == 0) | ((ys % bh) == bh - 1)).astype(img.dtype).reshape(1, 1, H, 1)
    qty = 0.9 * mask_x + 0.9 * mask_y
    padded = jnp.pad(img, ((0, 0), (0, 0), (1, 1), (1, 1)), mode="edge")
    center = padded[:, :, 1:-1, 1:-1]
    left = padded[:, :, 1:-1, :-2]
    right = padded[:, :, 1:-1, 2:]
    up = padded[:, :, :-2, 1:-1]
    down = padded[:, :, 2:, 1:-1]
    filtered = center + (left + right) / 2 * mask_x + (up + down) / 2 * mask_y - qty
    filtered = 0.0 + _torch_softplus(filtered - 0.0) - _torch_softplus(filtered - 2.0)
    result = jnp.where(qty == 1.0, center, filtered)
    return result / 2


def _reference_forward_eval(frame_idxs, sequence, blocks):
    H, W = IMG_SIZE
    bh, bw = BLOCK_SIZE
    seq = jnp.take(sequence, frame_idxs.astype(jnp.int32), axis=0)                  # [B, T, N]
    w = jax.nn.one_hot(jnp.argmax(seq, axis=-1), NBLOCKS, dtype=jnp.float32)        # [B, T, N]
    uf = jnp.matmul(w, blocks.reshape(NBLOCKS, BLOCK_LEN))                          # [B, T, 16]
    img = (uf.reshape(-1, TILES_Y, TILES_X, bh, bw)
             .transpose(0, 1, 3, 2, 4)
             .reshape(-1, 1, H, W))                                                 # torch Fold
    return _deblocking_filter_ref(img)


if __name__ == "__main__":
    key = jax.random.PRNGKey(0)
    k_blocks, k_seq, k_gumbel = jax.random.split(key, 3)

    # Deterministic synthetic parameters (shapes from the module's __init__ / init_* methods).
    blocks = jax.random.uniform(k_blocks, (NBLOCKS,) + BLOCK_SIZE, dtype=jnp.float32)
    sequence = jax.random.normal(k_seq, (N_SEQUENCE, TILES_PER_IMG, NBLOCKS), dtype=jnp.float32)
    frame_idxs = jnp.array([0, 3], dtype=jnp.int32)            # batch of 2 frame indices

    # Eval path (argmax one-hot) + reference check (loose atol: MXU f32 matmul may use bf16 passes).
    out_eval = jax.block_until_ready(
        image_reconstruction_forward(frame_idxs, sequence, blocks, training=False))
    ref_eval = jax.block_until_ready(_reference_forward_eval(frame_idxs, sequence, blocks))
    assert out_eval.shape == (2, 1, IMG_SIZE[0], IMG_SIZE[1]) and out_eval.dtype == jnp.float32
    assert bool(jnp.all(jnp.isfinite(out_eval)))
    max_err = float(jnp.max(jnp.abs(out_eval - ref_eval)))
    assert max_err < 5e-2, f"eval mismatch vs reference: {max_err}"

    # Training path (gumbel-softmax) smoke test.
    out_train = jax.block_until_ready(
        image_reconstruction_forward(frame_idxs, sequence, blocks, training=True, rng_key=k_gumbel))
    assert out_train.shape == out_eval.shape and out_train.dtype == jnp.float32
    assert bool(jnp.all(jnp.isfinite(out_train)))

    print("KERNEL_OK")
</pallas_src>

<mosaic_0001>
module attributes {stable_mosaic.version = 11 : i64} {
  func.func @_eval_kernel(%arg0: i32, %arg1: memref<16x2x32xf32, #tpu.memory_space<vmem>>, %arg2: memref<16x32x256xf32, #tpu.memory_space<vmem>>, %arg3: memref<256x256xf32, #tpu.memory_space<vmem>>, %arg4: memref<1x256xf32, #tpu.memory_space<vmem>>, %arg5: memref<2x256xf32, #tpu.memory_space<vmem>>) attributes {dimension_semantics = [#tpu.dimension_semantics<parallel>], iteration_bounds = array<i64: 1>, scalar_prefetch = 0 : i64, scratch_operands = 0 : i64, tpu.core_type = #tpu.core_type<tc>, window_params = [{transform_indices = @transform_0, window_bounds = array<i64: 16, 2, 32>}, {pipeline_mode = #tpu.pipeline_mode<synchronous>, transform_indices = @transform_1, window_bounds = array<i64: 16, 32, 256>}, {pipeline_mode = #tpu.pipeline_mode<synchronous>, transform_indices = @transform_2, window_bounds = array<i64: 256, 256>}, {pipeline_mode = #tpu.pipeline_mode<synchronous>, transform_indices = @transform_3, window_bounds = array<i64: 1, 256>}, {transform_indices = @transform_4, window_bounds = array<i64: 2, 256>}]} {
    %c0 = arith.constant 0 : index
    %c0_0 = arith.constant 0 : index
    %c0_1 = arith.constant 0 : index
    %0 = vector.load %arg1[%c0, %c0_0, %c0_1] : memref<16x2x32xf32, #tpu.memory_space<vmem>>, vector<16x2x32xf32>
    %cst = arith.constant dense<0xFF800000> : vector<16x2xf32>
    %1 = vector.multi_reduction <maximumf>, %0, %cst [2] : vector<16x2x32xf32> to vector<16x2xf32>
    %2 = vector.shape_cast %1 : vector<16x2xf32> to vector<16x2x1xf32>
    %3 = tpu.iota {dimensions = array<i32: 2>} : vector<16x2x32xi32>
    %4 = vector.broadcast %2 : vector<16x2x1xf32> to vector<16x2x32xf32>
    %5 = arith.cmpf oeq, %0, %4 : vector<16x2x32xf32>
    %c32_i32 = arith.constant 32 : i32
    %6 = vector.broadcast %c32_i32 : i32 to vector<16x2x32xi32>
    %7 = arith.select %5, %3, %6 : vector<16x2x32xi1>, vector<16x2x32xi32>
    %cst_2 = arith.constant dense<2147483647> : vector<16x2xi32>
    %8 = vector.multi_reduction <minsi>, %7, %cst_2 [2] : vector<16x2x32xi32> to vector<16x2xi32>
    %9 = vector.shape_cast %8 : vector<16x2xi32> to vector<16x2x1xi32>
    %10 = vector.broadcast %9 : vector<16x2x1xi32> to vector<16x2x32xi32>
    %11 = arith.cmpi eq, %3, %10 : vector<16x2x32xi32>
    %12 = arith.extui %11 : vector<16x2x32xi1> to vector<16x2x32xi32>
    %13 = arith.sitofp %12 : vector<16x2x32xi32> to vector<16x2x32xf32>
    %c0_3 = arith.constant 0 : index
    %c0_4 = arith.constant 0 : index
    %c0_5 = arith.constant 0 : index
    %14 = vector.load %arg2[%c0_3, %c0_4, %c0_5] : memref<16x32x256xf32, #tpu.memory_space<vmem>>, vector<16x32x256xf32>
    %cst_6 = arith.constant dense<0.000000e+00> : vector<16x2x256xf32>
    %15 = tpu.matmul %13, %14, %cst_6 {dimension_numbers = #tpu.dot_dimension_numbers<[2], [1], [1], [2], [0, 0, 0, 1, 1, 2], [0], [0]>} : vector<16x2x32xf32>, vector<16x32x256xf32>, vector<16x2x256xf32> -> vector<16x2x256xf32>
    %cst_7 = arith.constant dense<0.000000e+00> : vector<2x256xf32>
    %16 = vector.multi_reduction <add>, %15, %cst_7 [0] : vector<16x2x256xf32> to vector<2x256xf32>
    %c0_8 = arith.constant 0 : index
    %c0_9 = arith.constant 0 : index
    %17 = vector.load %arg3[%c0_8, %c0_9] : memref<256x256xf32, #tpu.memory_space<vmem>>, vector<256x256xf32>
    %cst_10 = arith.constant dense<0.000000e+00> : vector<2x256xf32>
    %18 = tpu.matmul %16, %17, %cst_10 {dimension_numbers = #tpu.dot_dimension_numbers<[1], [0], [0], [1], [0, 0, 1, 1], [], []>} : vector<2x256xf32>, vector<256x256xf32>, vector<2x256xf32> -> vector<2x256xf32>
    %c0_11 = arith.constant 0 : index
    %c0_12 = arith.constant 0 : index
    %19 = vector.load %arg4[%c0_11, %c0_12] : memref<1x256xf32, #tpu.memory_space<vmem>>, vector<1x256xf32>
    %20 = vector.broadcast %19 : vector<1x256xf32> to vector<2x256xf32>
    %21 = arith.subf %18, %20 : vector<2x256xf32>
    %cst_13 = arith.constant 0.000000e+00 : f32
    %22 = vector.broadcast %cst_13 : f32 to vector<2x256xf32>
    %23 = arith.subf %21, %22 : vector<2x256xf32>
    %cst_14 = arith.constant 2.000000e+01 : f32
    %24 = vector.broadcast %cst_14 : f32 to vector<2x256xf32>
    %25 = arith.mulf %23, %24 : vector<2x256xf32>
    %cst_15 = arith.constant 2.000000e+01 : f32
    %26 = vector.broadcast %cst_15 : f32 to vector<2x256xf32>
    %27 = arith.minimumf %25, %26 : vector<2x256xf32>
    %28 = math.exp %27 : vector<2x256xf32>
    %cst_16 = arith.constant 1.000000e+00 : f32
    %29 = vector.broadcast %cst_16 : f32 to vector<2x256xf32>
    %30 = arith.addf %29, %28 : vector<2x256xf32>
    %31 = math.log %30 : vector<2x256xf32>
    %cst_17 = arith.constant 2.000000e+01 : f32
    %32 = vector.broadcast %cst_17 : f32 to vector<2x256xf32>
    %33 = arith.divf %31, %32 : vector<2x256xf32>
    %cst_18 = arith.constant 2.000000e+01 : f32
    %34 = vector.broadcast %cst_18 : f32 to vector<2x256xf32>
    %35 = arith.cmpf ogt, %25, %34 : vector<2x256xf32>
    %36 = arith.select %35, %23, %33 : vector<2x256xi1>, vector<2x256xf32>
    %cst_19 = arith.constant 0.000000e+00 : f32
    %37 = vector.broadcast %cst_19 : f32 to vector<2x256xf32>
    %38 = arith.addf %37, %36 : vector<2x256xf32>
    %cst_20 = arith.constant 1.000000e+00 : f32
    %39 = vector.broadcast %cst_20 : f32 to vector<2x256xf32>
    %40 = arith.subf %21, %39 : vector<2x256xf32>
    %cst_21 = arith.constant 2.000000e+01 : f32
    %41 = vector.broadcast %cst_21 : f32 to vector<2x256xf32>
    %42 = arith.mulf %40, %41 : vector<2x256xf32>
    %cst_22 = arith.constant 2.000000e+01 : f32
    %43 = vector.broadcast %cst_22 : f32 to vector<2x256xf32>
    %44 = arith.minimumf %42, %43 : vector<2x256xf32>
    %45 = math.exp %44 : vector<2x256xf32>
    %cst_23 = arith.constant 1.000000e+00 : f32
    %46 = vector.broadcast %cst_23 : f32 to vector<2x256xf32>
    %47 = arith.addf %46, %45 : vector<2x256xf32>
    %48 = math.log %47 : vector<2x256xf32>
    %cst_24 = arith.constant 2.000000e+01 : f32
    %49 = vector.broadcast %cst_24 : f32 to vector<2x256xf32>
    %50 = arith.divf %48, %49 : vector<2x256xf32>
    %cst_25 = arith.constant 2.000000e+01 : f32
    %51 = vector.broadcast %cst_25 : f32 to vector<2x256xf32>
    %52 = arith.cmpf ogt, %42, %51 : vector<2x256xf32>
    %53 = arith.select %52, %40, %50 : vector<2x256xi1>, vector<2x256xf32>
    %54 = arith.subf %38, %53 : vector<2x256xf32>
    %c0_26 = arith.constant 0 : index
    %c0_27 = arith.constant 0 : index
    %55 = vector.load %arg5[%c0_26, %c0_27] : memref<2x256xf32, #tpu.memory_space<vmem>>, vector<2x256xf32>
    tpu.vector_store %arg5[%c0_26, %c0_27], %54 {strides = array<i32>} : memref<2x256xf32, #tpu.memory_space<vmem>>, vector<2x256xf32>,
    return
  }
  func.func @transform_0(%arg0: i32) -> (i32, i32, i32) {
    %c0_i32 = arith.constant 0 : i32
    %c0_i32_0 = arith.constant 0 : i32
    %c0_i32_1 = arith.constant 0 : i32
    return %c0_i32, %arg0, %c0_i32_0 : i32, i32, i32
  }
  func.func @transform_1(%arg0: i32) -> (i32, i32, i32) {
    %c0_i32 = arith.constant 0 : i32
    %c0_i32_0 = arith.constant 0 : i32
    %c0_i32_1 = arith.constant 0 : i32
    %c0_i32_2 = arith.constant 0 : i32
    return %c0_i32, %c0_i32_0, %c0_i32_1 : i32, i32, i32
  }
  func.func @transform_2(%arg0: i32) -> (i32, i32) {
    %c0_i32 = arith.constant 0 : i32
    %c0_i32_0 = arith.constant 0 : i32
    %c0_i32_1 = arith.constant 0 : i32
    return %c0_i32, %c0_i32_0 : i32, i32
  }
  func.func @transform_3(%arg0: i32) -> (i32, i32) {
    %c0_i32 = arith.constant 0 : i32
    %c0_i32_0 = arith.constant 0 : i32
    %c0_i32_1 = arith.constant 0 : i32
    return %c0_i32, %c0_i32_0 : i32, i32
  }
  func.func @transform_4(%arg0: i32) -> (i32, i32) {
    %c0_i32 = arith.constant 0 : i32
    %c0_i32_0 = arith.constant 0 : i32
    return %arg0, %c0_i32 : i32, i32
  }
}

</mosaic_0001>

<bundles_post_ra>
// kernel: image_reconstruction_forward.1
= control target key start
LH: loop header
LB: loop body
LE: loop exit
PB: predicated region body
PF: predicated region fallthrough
CT: control target
= control target key end

     0   :  { %vm33_vm0 = vcmask 254976   ;;  %v82_v26 = vlaneseq  ;;  %s2644_s0 = inlined_call_operand.vmem [shape: f32[16,2,32], index: 0, kind: input, shape index: {}]   ;;  %s2645_s1 = inlined_call_operand.vmem [shape: f32[16,32,256], index: 1, kind: input, shape index: {}]   ;;  %s2646_s2 = inlined_call_operand.vmem [shape: f32[256,256], index: 2, kind: input, shape index: {}]   ;;  %s2647_s3 = inlined_call_operand.vmem [shape: f32[1,256], index: 3, kind: input, shape index: {}]   ;;  %s2648_s4 = inlined_call_operand.vmem [shape: f32[2,256], index: 4, kind: output, shape index: {}]  }
   0x1   :  { %v20_v0 = vld [vmem:[%s2644_s0 + $0x6] sm:$0x3]  ;;  %v18_v1 = vld [vmem:[%s2644_s0 + $0x2] sm:$0x3]  ;;  %v1605_v2 = vld [vmem:[%s2644_s0 + $0xa] sm:$0x3] }
   0x2   :  { %v43_v3 = vsel %vm33_vm0, %v20_v0, -inf  ;;  %v37_v4 = vsel %vm33_vm0, %v18_v1, -inf  ;;  %v49_v5 = vsel %vm33_vm0, %v1605_v2, -inf  ;;  %v17_v6 = vld [vmem:[%s2644_s0] sm:$0x3]  ;;  %v1675_v27 = vand.u32 127, %v82_v26 }
   0x3   :  { %44 = vmax.xlane.f32.xlu1 %v43_v3  ;;  %38 = vmax.xlane.f32.xlu0 %v37_v4  ;;  %v19_v7 = vld [vmem:[%s2644_s0 + $0x4] sm:$0x3]  ;;  %v1620_v8 = vld [vmem:[%s2644_s0 + $0x8] sm:$0x3]  ;;  %v34_v9 = vsel %vm33_vm0, %v17_v6, -inf }
   0x4   :  { %50 = vmax.xlane.f32.xlu2 %v49_v5  ;;  %v40_v10 = vsel %vm33_vm0, %v19_v7, -inf  ;;  %v46_v11 = vsel %vm33_vm0, %v1620_v8, -inf  ;;  %v1629_v12 = vld [vmem:[%s2644_s0 + $0xe] sm:$0x3]  ;;  %v1634_v13 = vld [vmem:[%s2644_s0 + $0xc] sm:$0x3] }
   0x5   :  { %v1639_v14 = vld [vmem:[%s2644_s0 + $0x12] sm:$0x3]  ;;  %v55_v15 = vsel %vm33_vm0, %v1629_v12, -inf  ;;  %v52_v16 = vsel %vm33_vm0, %v1634_v13, -inf  ;;  %v1650_v18 = vld [vmem:[%s2644_s0 + $0x10] sm:$0x3] }
   0x6   :  { %v61_v17 = vsel %vm33_vm0, %v1639_v14, -inf  ;;  %v1655_v19 = vld [vmem:[%s2644_s0 + $0x16] sm:$0x3]  ;;  %v1660_v20 = vld [vmem:[%s2644_s0 + $0x14] sm:$0x3]  ;;  %v58_v21 = vsel %vm33_vm0, %v1650_v18, -inf }
   0x7   :  { %v67_v22 = vsel %vm33_vm0, %v1655_v19, -inf  ;;  %v64_v23 = vsel %vm33_vm0, %v1660_v20, -inf  ;;  %v1671_v24 = vld [vmem:[%s2644_s0 + $0x1a] sm:$0x3]  ;;  %v1697_v43 = vld [vmem:[%s2644_s0 + $0x1c] sm:$0x3] }
   0x8   :  { %v73_v25 = vsel %vm33_vm0, %v1671_v24, -inf  ;;  %v1703_v45 = vld [vmem:[%s2644_s0 + $0x18] sm:$0x3]  ;;  %v76_v48 = vsel %vm33_vm0, %v1697_v43, -inf  ;;  %v1732_v59 = vld [vmem:[%s2644_s0 + $0x1e] sm:$0x3] }
   0x9   :  { %v70_v50 = vsel %vm33_vm0, %v1703_v45, -inf }
   0xb   :  { %35 = vmax.xlane.f32.xlu0 %v34_v9  ;;  %41 = vmax.xlane.f32.xlu1 %v40_v10 }
   0xc   :  { %47 = vmax.xlane.f32.xlu2 %v46_v11 }
  0x13   :  { %56 = vmax.xlane.f32.xlu0 %v55_v15  ;;  %53 = vmax.xlane.f32.xlu1 %v52_v16 }
  0x14   :  { %62 = vmax.xlane.f32.xlu2 %v61_v17 }
  0x1b   :  { %59 = vmax.xlane.f32.xlu0 %v58_v21  ;;  %68 = vmax.xlane.f32.xlu1 %v67_v22 }
  0x1c   :  { %65 = vmax.xlane.f32.xlu2 %v64_v23 }
  0x23   :  { %74 = vmax.xlane.f32.xlu1 %v73_v25 }
  0x76   :  { %v45_v28 = vpop.xlane.xlu1 %44  ;;  %v39_v29 = vpop.xlane.xlu0 %38 }
  0x77   :  { %vm87_vm1 = vcmp.eq.f32.partialorder %v20_v0, %v45_v28  ;;  %vm85_vm2 = vcmp.eq.f32.partialorder %v18_v1, %v39_v29  ;;  %v51_v30 = vpop.xlane.xlu2 %50  ;;  %v79_v1 = vsel %vm33_vm0, %v1732_v59, -inf }
  0x78   :  { %v103_v31 = vsel %vm87_vm1, %v1675_v27, 32  ;;  %v101_v32 = vsel %vm85_vm2, %v1675_v27, 32  ;;  %vm89_vm6 = vcmp.eq.f32.partialorder %v1605_v2, %v51_v30 }
  0x79   :  { %v1680_v33 = vsel %vm33_vm0, %v103_v31, 2147483647  ;;  %v1683_v34 = vsel %vm33_vm0, %v101_v32, 2147483647  ;;  %v105_v57 = vsel %vm89_vm6, %v1675_v27, 32 }
  0x7a   :  { %v163_v35 = vshra.s32 %v1680_v33, 16  ;;  %v133_v36 = vshra.s32 %v1683_v34, 16  ;;  %v1741_v0 = vsel %vm33_vm0, %v105_v57, 2147483647 }
  0x7c   :  { %v1687_v37 = vcvt.s32.f32 %v163_v35  ;;  %v1689_v38 = vcvt.s32.f32 %v133_v36  ;;  %v162_v35 = vand.u32 65535, %v1680_v33  ;;  %v132_v36 = vand.u32 65535, %v1683_v34 }
  0x7e   :  { %166 = vmin.xlane.f32.xlu1 %v1687_v37  ;;  %136 = vmin.xlane.f32.xlu0 %v1689_v38  ;;  %v36_v39 = vpop.xlane.xlu0 %35  ;;  %v42_v40 = vpop.xlane.xlu1 %41 }
  0x7f   :  { %vm84_vm3 = vcmp.eq.f32.partialorder %v17_v6, %v36_v39  ;;  %v48_v41 = vpop.xlane.xlu2 %47  ;;  %vm86_vm4 = vcmp.eq.f32.partialorder %v19_v7, %v42_v40  ;;  %v193_v6 = vshra.s32 %v1741_v0, 16 }
  0x80   :  { %v100_v42 = vsel %vm84_vm3, %v1675_v27, 32  ;;  %v102_v44 = vsel %vm86_vm4, %v1675_v27, 32  ;;  %vm88_vm5 = vcmp.eq.f32.partialorder %v1620_v8, %v48_v41 }
  0x81   :  { %v1706_v46 = vsel %vm33_vm0, %v100_v42, 2147483647  ;;  %v1712_v49 = vsel %vm33_vm0, %v102_v44, 2147483647  ;;  %v104_v55 = vsel %vm88_vm5, %v1675_v27, 32  ;;  %v1771_v16 = vcvt.s32.f32 %v193_v6 }
  0x82   :  { %v118_v47 = vshra.s32 %v1706_v46, 16  ;;  %v148_v53 = vshra.s32 %v1712_v49, 16  ;;  %v1738_v63 = vsel %vm33_vm0, %v104_v55, 2147483647  ;;  %v164_v44 = vcvt.s32.f32 %v162_v35 }
  0x83   :  { %v178_v4 = vshra.s32 %v1738_v63, 16 }
  0x84   :  { %v1716_v51 = vcvt.s32.f32 %v118_v47  ;;  %v1734_v61 = vcvt.s32.f32 %v148_v53  ;;  %v134_v47 = vcvt.s32.f32 %v132_v36 }
  0x86   :  { %77 = vmax.xlane.f32.xlu1 %v76_v48  ;;  %71 = vmax.xlane.f32.xlu0 %v70_v50  ;;  %v57_v52 = vpop.xlane.xlu0 %56  ;;  %v54_v60 = vpop.xlane.xlu1 %53  ;;  %v117_v48 = vand.u32 65535, %v1706_v46 }
  0x87   :  { %121 = vmin.xlane.f32.xlu2 %v1716_v51  ;;  %vm91_vm7 = vcmp.eq.f32.partialorder %v1629_v12, %v57_v52  ;;  %v63_v54 = vpop.xlane.xlu2 %62  ;;  %vm90_vm9 = vcmp.eq.f32.partialorder %v1634_v13, %v54_v60  ;;  %v1762_v12 = vcvt.s32.f32 %v178_v4 }
  0x88   :  { %v107_v56 = vsel %vm91_vm7, %v1675_v27, 32  ;;  %vm93_vm8 = vcmp.eq.f32.partialorder %v1639_v14, %v63_v54  ;;  %v106_v11 = vsel %vm90_vm9, %v1675_v27, 32 }
  0x89   :  { %v1727_v58 = vsel %vm33_vm0, %v107_v56, 2147483647  ;;  %v109_v7 = vsel %vm93_vm8, %v1675_v27, 32  ;;  %v147_v56 = vand.u32 65535, %v1712_v49  ;;  %v419_v49 = vld [vmem:[%s2645_s1 + $0x78] sm:$0xff] }
  0x8a   :  { %v223_v62 = vshra.s32 %v1727_v58, 16  ;;  %v1766_v14 = vsel %vm33_vm0, %v109_v7, 2147483647  ;;  %611 = vmatpush.msra.mxu3 %v419_v49  ;;  %v406_v49 = vld [vmem:[%s2645_s1 + $0x10] sm:$0xff] }
  0x8b   :  { %v253_v21 = vshra.s32 %v1766_v14, 16 }
  0x8c   :  { %v1745_v2 = vcvt.s32.f32 %v223_v62  ;;  %v149_v62 = vcvt.s32.f32 %v147_v56  ;;  %v434_v56 = vld [vmem:[%s2645_s1 + $0xf0] sm:$0xff] }
  0x8d   :  { %v1786_v26 = vcvt.s32.f32 %v253_v21 }
  0x8e   :  { %151 = vmin.xlane.f32.xlu0 %v1734_v61  ;;  %226 = vmin.xlane.f32.xlu1 %v1745_v2  ;;  %v60_v3 = vpop.xlane.xlu0 %59  ;;  %v69_v17 = vpop.xlane.xlu1 %68 }
  0x8f   :  { %80 = vmax.xlane.f32.xlu2 %v79_v1  ;;  %vm92_vm10 = vcmp.eq.f32.partialorder %v1650_v18, %v60_v3  ;;  %v66_v5 = vpop.xlane.xlu2 %65  ;;  %v1774_v18 = vsel %vm33_vm0, %v106_v11, 2147483647  ;;  %vm95_vm12 = vcmp.eq.f32.partialorder %v1655_v19, %v69_v17  ;;  %v418_v1 = vld [vmem:[%s2645_s1 + $0x70] sm:$0xff] }
  0x90   :  { %v108_v8 = vsel %vm92_vm10, %v1675_v27, 32  ;;  %vm94_vm11 = vcmp.eq.f32.partialorder %v1660_v20, %v66_v5  ;;  %v208_v23 = vshra.s32 %v1774_v18, 16  ;;  %v111_v25 = vsel %vm95_vm12, %v1675_v27, 32  ;;  %591 = vmatpush.msra.mxu2 %v418_v1  ;;  %v433_v1 = vld [vmem:[%s2645_s1 + $0xe8] sm:$0xff] }
  0x91   :  { %v1758_v9 = vsel %vm33_vm0, %v108_v8, 2147483647  ;;  %v110_v10 = vsel %vm94_vm11, %v1675_v27, 32  ;;  %v1793_v30 = vsel %vm33_vm0, %v111_v25, 2147483647  ;;  %v192_v8 = vand.u32 65535, %v1741_v0 }
  0x92   :  { %v238_v13 = vshra.s32 %v1758_v9, 16  ;;  %v1769_v15 = vsel %vm33_vm0, %v110_v10, 2147483647  ;;  %v1790_v29 = vcvt.s32.f32 %v208_v23  ;;  %v283_v19 = vshra.s32 %v1793_v30, 16 }
  0x93   :  { %v268_v22 = vshra.s32 %v1769_v15, 16  ;;  %v194_v21 = vcvt.s32.f32 %v192_v8  ;;  %v222_v0 = vand.u32 65535, %v1727_v58  ;;  %v207_v25 = vand.u32 65535, %v1774_v18  ;;  %v405_v8 = vld [vmem:[%s2645_s1 + $0x8] sm:$0xff] }
  0x94   :  { %v1776_v20 = vcvt.s32.f32 %v238_v13  ;;  %v1799_v31 = vcvt.s32.f32 %v283_v19  ;;  %v252_v58 = vand.u32 65535, %v1766_v14 }
  0x95   :  { %v1788_v28 = vcvt.s32.f32 %v268_v22  ;;  %v177_v22 = vand.u32 65535, %v1738_v63  ;;  %v224_v63 = vcvt.s32.f32 %v222_v0  ;;  %v209_v36 = vcvt.s32.f32 %v207_v25  ;;  %v427_v0 = vld [vmem:[%s2645_s1 + $0xb8] sm:$0xff]  ;;  %v424_v25 = vld [vmem:[%s2645_s1 + $0xa0] sm:$0xff] }
  0x96   :  { %181 = vmin.xlane.f32.xlu0 %v1762_v12  ;;  %241 = vmin.xlane.f32.xlu1 %v1776_v20  ;;  %v75_v32 = vpop.xlane.xlu1 %74 }
  0x97   :  { %196 = vmin.xlane.f32.xlu2 %v1771_v16  ;;  %vm97_vm13 = vcmp.eq.f32.partialorder %v1671_v24, %v75_v32  ;;  %v179_v19 = vcvt.s32.f32 %v177_v22  ;;  %v429_v22 = vld [vmem:[%s2645_s1 + $0xc8] sm:$0xff] }
  0x98   :  { %v113_v39 = vsel %vm97_vm13, %v1675_v27, 32  ;;  %vm532_vm13 = vcmask 261120  }
  0x99   :  { %v1807_v40 = vsel %vm33_vm0, %v113_v39, 2147483647 }
  0x9a   :  { %v313_v34 = vshra.s32 %v1807_v40, 16 }
  0x9c   :  { %v1819_v50 = vcvt.s32.f32 %v313_v34 }
  0x9e   :  { %256 = vmin.xlane.f32.xlu0 %v1786_v26  ;;  %271 = vmin.xlane.f32.xlu1 %v1788_v28 }
  0x9f   :  { %211 = vmin.xlane.f32.xlu2 %v1790_v29 }
  0xa7   :  { %286 = vmin.xlane.f32.xlu2 %v1799_v31 }
  0xf1   :  { %v1809_v41 = vpop.xlane.xlu1 %166  ;;  %v1811_v42 = vpop.xlane.xlu0 %136 }
  0xf2   :  { %vm168_vm14 = vcmp.eq.f32.partialorder %v1687_v37, %v1809_v41  ;;  %vm138_vm15 = vcmp.eq.f32.partialorder %v1689_v38, %v1811_v42  ;;  %v119_v37 = vcvt.s32.f32 %v117_v48 }
  0xf3   :  { %v169_v24 = vsel %vm168_vm14, %v164_v44, inf  ;;  %v139_v33 = vsel %vm138_vm15, %v134_v47, inf  ;;  %v282_v44 = vand.u32 65535, %v1793_v30  ;;  %v254_v47 = vcvt.s32.f32 %v252_v58  ;;  %v421_v58 = vld [vmem:[%s2645_s1 + $0x88] sm:$0xff] }
  0xf4   :  { %170 = vmin.xlane.f32.xlu1 %v169_v24  ;;  %140 = vmin.xlane.f32.xlu0 %v139_v33 }
  0xf9   :  { %v72_v52 = vpop.xlane.xlu0 %71  ;;  %v78_v53 = vpop.xlane.xlu1 %77 }
  0xfa   :  { %v1821_v54 = vpop.xlane.xlu2 %121  ;;  %vm96_vm1 = vcmp.eq.f32.partialorder %v1703_v45, %v72_v52  ;;  %vm98_vm2 = vcmp.eq.f32.partialorder %v1697_v43, %v78_v53  ;;  %v416_v52 = vld [vmem:[%s2645_s1 + $0x60] sm:$0xff] }
  0xfb   :  { %v112_v38 = vsel %vm96_vm1, %v1675_v27, 32  ;;  %vm123_vm3 = vcmp.eq.f32.partialorder %v1716_v51, %v1821_v54  ;;  %v114_v57 = vsel %vm98_vm2, %v1675_v27, 32  ;;  %592 = vmatpush.msra.mxu2 %v416_v52  ;;  %v412_v53 = vld [vmem:[%s2645_s1 + $0x40] sm:$0xff] }
  0xfc   :  { %v1829_v55 = vsel %vm33_vm0, %v112_v38, 2147483647  ;;  %v124_v46 = vsel %vm123_vm3, %v119_v37, inf  ;;  %316 = vmin.xlane.f32.xlu0 %v1819_v50  ;;  %v1836_v43 = vsel %vm33_vm0, %v114_v57, 2147483647  ;;  %v413_v37 = vld [vmem:[%s2645_s1 + $0x48] sm:$0xff] }
  0xfd   :  { %125 = vmin.xlane.f32.xlu2 %v124_v46  ;;  %v298_v45 = vshra.s32 %v1829_v55, 16  ;;  %v410_v38 = vld [vmem:[%s2645_s1 + $0x30] sm:$0xff]  ;;  %v411_v46 = vld [vmem:[%s2645_s1 + $0x38] sm:$0xff] }
  0xfe   :  { %548 = vmatpush.msra.mxu0 %v410_v38  ;;  %568 = vmatpush.msra.mxu1 %v411_v46  ;;  %v435_v57 = vld [vmem:[%s2645_s1 + $0xf8] sm:$0xff] }
  0xff   :  { %v1849_v3 = vcvt.s32.f32 %v298_v45  ;;  %v408_v45 = vld [vmem:[%s2645_s1 + $0x20] sm:$0xff] }
 0x100   :  { %549 = vmatpush.msra.mxu0 %v408_v45 }
 0x101   :  { %v1838_v60 = vpop.xlane.xlu0 %151 }
 0x102   :  { %v81_v51 = vpop.xlane.xlu2 %80  ;;  %vm153_vm4 = vcmp.eq.f32.partialorder %v1734_v61, %v1838_v60  ;;  %v328_v61 = vshra.s32 %v1836_v43, 16  ;;  %550 = vmatpush.msra.mxu0 %v406_v49  ;;  %v442_v49 = vld [vmem:[%s2645_s1 + $0x130] sm:$0xff] }
 0x103   :  { %vm99_vm5 = vcmp.eq.f32.partialorder %v1732_v59, %v81_v51  ;;  %v154_v4 = vsel %vm153_vm4, %v149_v62, inf  ;;  %v1859_v59 = vpop.xlane.xlu1 %226  ;;  %v409_v62 = vld [vmem:[%s2645_s1 + $0x28] sm:$0xff]  ;;  %v432_v51 = vld [vmem:[%s2645_s1 + $0xe0] sm:$0xff] }
 0x104   :  { %v115_v5 = vsel %vm99_vm5, %v1675_v27, 32  ;;  %155 = vmin.xlane.f32.xlu0 %v154_v4  ;;  %v1863_v11 = vcvt.s32.f32 %v328_v61  ;;  %vm228_vm7 = vcmp.eq.f32.partialorder %v1745_v2, %v1859_v59  ;;  %v237_v2 = vand.u32 65535, %v1758_v9  ;;  %569 = vmatpush.msra.mxu1 %v409_v62  ;;  %v407_v4 = vld [vmem:[%s2645_s1 + $0x18] sm:$0xff] }
 0x105   :  { %v1854_v6 = vsel %vm33_vm0, %v115_v5, 2147483647  ;;  %301 = vmin.xlane.f32.xlu2 %v1849_v3  ;;  %v430_v5 = vld [vmem:[%s2645_s1 + $0xd0] sm:$0xff]  ;;  %v431_v61 = vld [vmem:[%s2645_s1 + $0xd8] sm:$0xff]  ;;  %v158_v62 = vcvt.f32.s32 %v1838_v60 }
 0x106   :  { %v343_v7 = vshra.s32 %v1854_v6, 16  ;;  %v239_v14 = vcvt.s32.f32 %v237_v2  ;;  %570 = vmatpush.msra.mxu1 %v407_v4  ;;  %v443_v4 = vld [vmem:[%s2645_s1 + $0x138] sm:$0xff] }
 0x107   :  { %v467_v60 = vld [vmem:[%s2645_s1 + $0x1f8] sm:$0xff] }
 0x108   :  { %v1861_v10 = vcvt.s32.f32 %v343_v7  ;;  %v404_v7 = vld [vmem:[%s2645_s1] sm:$0xff]  ;;  %571 = vmatpush.msra.mxu1 %v405_v8  ;;  %v441_v8 = vld [vmem:[%s2645_s1 + $0x128] sm:$0xff] }
 0x109   :  { %v1865_v13 = vpop.xlane.xlu0 %181  ;;  %551 = vmatpush.msra.mxu0 %v404_v7  ;;  %v440_v7 = vld [vmem:[%s2645_s1 + $0x120] sm:$0xff] }
 0x10a   :  { %v1867_v17 = vpop.xlane.xlu2 %196  ;;  %346 = vmin.xlane.f32.xlu1 %v1861_v10  ;;  %vm183_vm6 = vcmp.eq.f32.partialorder %v1762_v12, %v1865_v13  ;;  %v229_v12 = vsel %vm228_vm7, %v224_v63, inf  ;;  %654 = vmatpush.msrb.mxu1 %v427_v0  ;;  %v423_v63 = vld [vmem:[%s2645_s1 + $0x98] sm:$0xff] }
 0x10b   :  { %vm198_vm0 = vcmp.eq.f32.partialorder %v1771_v16, %v1867_v17  ;;  %v1878_v32 = vpop.xlane.xlu1 %241  ;;  %v184_v35 = vsel %vm183_vm6, %v179_v19, inf  ;;  %v425_v19 = vld [vmem:[%s2645_s1 + $0xa8] sm:$0xff] }
 0x10c   :  { %v199_v23 = vsel %vm198_vm0, %v194_v21, inf  ;;  %331 = vmin.xlane.f32.xlu0 %v1863_v11  ;;  %vm243_vm10 = vcmp.eq.f32.partialorder %v1776_v20, %v1878_v32  ;;  %v428_v21 = vld [vmem:[%s2645_s1 + $0xc0] sm:$0xff]  ;;  %655 = vmatpush.msrb.mxu1 %v425_v19  ;;  %v342_v19 = vand.u32 65535, %v1854_v6  ;;  %v462_v6 = vld [vmem:[%s2645_s1 + $0x1d0] sm:$0xff] }
 0x10d   :  { %200 = vmin.xlane.f32.xlu2 %v199_v23  ;;  %v244_v9 = vsel %vm243_vm10, %v239_v14, inf  ;;  %v426_v23 = vld [vmem:[%s2645_s1 + $0xb0] sm:$0xff] }
 0x10e   :  { %634 = vmatpush.msrb.mxu0 %v426_v23  ;;  %656 = vmatpush.msrb.mxu1 %v423_v63  ;;  %v439_v63 = vld [vmem:[%s2645_s1 + $0x118] sm:$0xff] }
 0x110   :  { %635 = vmatpush.msrb.mxu0 %v424_v25  ;;  %657 = vmatpush.msrb.mxu1 %v421_v58  ;;  %v464_v25 = vld [vmem:[%s2645_s1 + $0x1e0] sm:$0xff] }
 0x111   :  { %v1884_v39 = vpop.xlane.xlu0 %256 }
 0x112   :  { %v1882_v16 = vpop.xlane.xlu2 %211  ;;  %185 = vmin.xlane.f32.xlu1 %v184_v35  ;;  %vm258_vm9 = vcmp.eq.f32.partialorder %v1786_v26, %v1884_v39  ;;  %v267_v26 = vand.u32 65535, %v1769_v15  ;;  %v414_v15 = vld [vmem:[%s2645_s1 + $0x50] sm:$0xff] }
 0x113   :  { %vm213_vm8 = vcmp.eq.f32.partialorder %v1790_v29, %v1882_v16  ;;  %v259_v24 = vsel %vm258_vm9, %v254_v47, inf  ;;  %v284_v29 = vcvt.s32.f32 %v282_v44  ;;  %v1897_v34 = vpop.xlane.xlu1 %271  ;;  %593 = vmatpush.msra.mxu2 %v414_v15  ;;  %v422_v35 = vld [vmem:[%s2645_s1 + $0x90] sm:$0xff]  ;;  %v173_v44 = vcvt.f32.s32 %v1809_v41 }
 0x114   :  { %v214_v18 = vsel %vm213_vm8, %v209_v36, inf  ;;  %vm273_vm12 = vcmp.eq.f32.partialorder %v1788_v28, %v1897_v34  ;;  %v269_v20 = vcvt.s32.f32 %v267_v26  ;;  %v415_v28 = vld [vmem:[%s2645_s1 + $0x58] sm:$0xff]  ;;  %636 = vmatpush.msrb.mxu0 %v422_v35  ;;  %v420_v36 = vld [vmem:[%s2645_s1 + $0x80] sm:$0xff]  ;;  %v312_v26 = vand.u32 65535, %v1807_v40  ;;  %v438_v35 = vld [vmem:[%s2645_s1 + $0x110] sm:$0xff] }
 0x115   :  { %230 = vmin.xlane.f32.xlu2 %v229_v12  ;;  %215 = vmin.xlane.f32.xlu0 %v214_v18  ;;  %v143_v12 = vcvt.f32.s32 %v1811_v42  ;;  %v451_v42 = vld [vmem:[%s2645_s1 + $0x178] sm:$0xff]  ;;  %v128_v41 = vcvt.f32.s32 %v1821_v54  ;;  %v448_v40 = vld [vmem:[%s2645_s1 + $0x160] sm:$0xff] }
 0x116   :  { %v274_v30 = vsel %vm273_vm12, %v269_v20, inf  ;;  %594 = vmatpush.msra.mxu2 %v412_v53  ;;  %637 = vmatpush.msrb.mxu0 %v420_v36  ;;  %v1569_v20 = vmov 0.0   ;;  %v446_v53 = vld [vmem:[%s2645_s1 + $0x150] sm:$0xff] }
 0x117   :  { %v144_v47 = vshll.u32 %v143_v12, 16  ;;  %v129_v38 = vshll.u32 %v128_v41, 16  ;;  %v327_v12 = vand.u32 65535, %v1836_v43  ;;  %v344_v43 = vcvt.s32.f32 %v342_v19  ;;  %v461_v41 = vld [vmem:[%s2645_s1 + $0x1c8] sm:$0xff]  ;;  %v474_v19 = vld [vmem:[%s2645_s1 + $0x230] sm:$0xff] }
 0x118   :  { %677 = vmatpush.msrb.mxu2 %v434_v56 }
 0x11a   :  { %v1895_v33 = vpop.xlane.xlu2 %286  ;;  %260 = vmin.xlane.f32.xlu1 %v259_v24  ;;  %678 = vmatpush.msrb.mxu2 %v432_v51  ;;  %v297_v51 = vand.u32 65535, %v1829_v55  ;;  %v466_v55 = vld [vmem:[%s2645_s1 + $0x1f0] sm:$0xff] }
 0x11b   :  { %vm288_vm11 = vcmp.eq.f32.partialorder %v1799_v31, %v1895_v33  ;;  %v417_v31 = vld [vmem:[%s2645_s1 + $0x68] sm:$0xff] }
 0x11c   :  { %v289_v48 = vsel %vm288_vm11, %v284_v29, inf  ;;  %612 = vmatpush.msra.mxu3 %v417_v31  ;;  %679 = vmatpush.msrb.mxu2 %v430_v5  ;;  %v449_v31 = vld [vmem:[%s2645_s1 + $0x168] sm:$0xff]  ;;  %v299_v0 = vcvt.s32.f32 %v297_v51 }
 0x11d   :  { %245 = vmin.xlane.f32.xlu2 %v244_v9  ;;  %290 = vmin.xlane.f32.xlu0 %v289_v48  ;;  %v174_v9 = vshll.u32 %v173_v44, 16  ;;  %v450_v48 = vld [vmem:[%s2645_s1 + $0x170] sm:$0xff]  ;;  %v203_v44 = vcvt.f32.s32 %v1867_v17  ;;  %v453_v51 = vld [vmem:[%s2645_s1 + $0x188] sm:$0xff] }
 0x11e   :  { %613 = vmatpush.msra.mxu3 %v415_v28  ;;  %680 = vmatpush.msrb.mxu2 %v428_v21  ;;  %v314_v28 = vcvt.s32.f32 %v312_v26  ;;  %v159_v21 = vshll.u32 %v158_v62, 16  ;;  %v458_v17 = vld [vmem:[%s2645_s1 + $0x1b0] sm:$0xff] }
 0x120   :  { %614 = vmatpush.msra.mxu3 %v413_v37  ;;  %v447_v37 = vld [vmem:[%s2645_s1 + $0x158] sm:$0xff] }
 0x122   :  { %275 = vmin.xlane.f32.xlu1 %v274_v30  ;;  %697 = vmatpush.msrb.mxu3 %v435_v57  ;;  %v445_v57 = vld [vmem:[%s2645_s1 + $0x148] sm:$0xff] }
 0x124   :  { %698 = vmatpush.msrb.mxu3 %v433_v1 }
 0x126   :  { %699 = vmatpush.msrb.mxu3 %v431_v61 }
 0x128   :  { %700 = vmatpush.msrb.mxu3 %v429_v22 }
 0x167   :  { %v171_v18 = vpop.xlane.xlu1 %170  ;;  %v141_v2 = vpop.xlane.xlu0 %140 }
 0x168   :  { %v142_v24 = vcvt.f32.s32 %v141_v2  ;;  %v172_v14 = vcvt.f32.s32 %v171_v18  ;;  %v436_v18 = vld [vmem:[%s2645_s1 + $0x100] sm:$0xff]  ;;  %v437_v2 = vld [vmem:[%s2645_s1 + $0x108] sm:$0xff] }
 0x16a   :  { %v145_v29 = vadd.s32 %v144_v47, %v142_v24  ;;  %v175_v52 = vadd.s32 %v174_v9, %v172_v14  ;;  %v463_v14 = vld [vmem:[%s2645_s1 + $0x1d8] sm:$0xff] }
 0x16c   :  { %vm357_vm14 = vcmp.eq.s32.totalorder %v1675_v27, %v145_v29  ;;  %vm359_vm1 = vcmp.eq.s32.totalorder %v1675_v27, %v175_v52  ;;  %v459_v29 = vld [vmem:[%s2645_s1 + $0x1b8] sm:$0xff]  ;;  %v204_v52 = vshll.u32 %v203_v44, 16  ;;  %v473_v44 = vld [vmem:[%s2645_s1 + $0x228] sm:$0xff] }
 0x16d   :  { %v1500_v30 = vsel %vm357_vm14, 1.0, %v1569_v20  ;;  %v1502_v1 = vsel %vm359_vm1, 1.0, %v1569_v20 }
 0x16e   :  { %1517 = vmatmul.msk.f32.vlgmr.msra.gmra.mxu2 %vm532_vm13, %v1500_v30  ;;  %1518 = vmatmul.msk.f32.vlgmr.msra.gmra.mxu3 %vm532_vm13, %v1500_v30  ;;  %v456_v30 = vld [vmem:[%s2645_s1 + $0x1a0] sm:$0xff] }
 0x16f   :  { %v2014_v15 = vpop.xlane.xlu0 %316  ;;  %763 = vmatpush.msra.mxu2 %v450_v48  ;;  %783 = vmatpush.msra.mxu3 %v451_v42  ;;  %v329_v48 = vcvt.s32.f32 %v327_v12 }
 0x170   :  { %v126_v54 = vpop.xlane.xlu2 %125  ;;  %vm318_vm15 = vcmp.eq.f32.partialorder %v1819_v50, %v2014_v15  ;;  %v444_v50 = vld [vmem:[%s2645_s1 + $0x140] sm:$0xff] }
 0x171   :  { %v127_v46 = vcvt.f32.s32 %v126_v54  ;;  %v319_v56 = vsel %vm318_vm15, %v314_v28, inf  ;;  %764 = vmatpush.msra.mxu2 %v448_v40  ;;  %784 = vmatpush.msra.mxu3 %v449_v31  ;;  %v457_v28 = vld [vmem:[%s2645_s1 + $0x1a8] sm:$0xff]  ;;  %v454_v54 = vld [vmem:[%s2645_s1 + $0x190] sm:$0xff] }
 0x172   :  { %320 = vmin.xlane.f32.xlu2 %v319_v56  ;;  %v483_v56 = vld [vmem:[%s2645_s1 + $0x278] sm:$0xff] }
 0x173   :  { %v130_v45 = vadd.s32 %v129_v38, %v127_v46  ;;  %765 = vmatpush.msra.mxu2 %v446_v53  ;;  %785 = vmatpush.msra.mxu3 %v447_v37  ;;  %v455_v37 = vld [vmem:[%s2645_s1 + $0x198] sm:$0xff]  ;;  %v233_v38 = vcvt.f32.s32 %v1859_v59  ;;  %v452_v59 = vld [vmem:[%s2645_s1 + $0x180] sm:$0xff] }
 0x175   :  { %vm356_vm2 = vcmp.eq.s32.totalorder %v1675_v27, %v130_v45  ;;  %766 = vmatpush.msra.mxu2 %v444_v50  ;;  %786 = vmatpush.msra.mxu3 %v445_v57  ;;  %v218_v57 = vcvt.f32.s32 %v1882_v16  ;;  %v480_v16 = vld [vmem:[%s2645_s1 + $0x260] sm:$0xff] }
 0x176   :  { %v1499_v5 = vsel %vm356_vm2, 1.0, %v1569_v20  ;;  %1521 = vmatmul.msk.f32.vlgmr.msrb.gmra.mxu2 %vm532_vm13, %v1502_v1  ;;  %1522 = vmatmul.msk.f32.vlgmr.msrb.gmra.mxu3 %vm532_vm13, %v1502_v1  ;;  %v481_v1 = vld [vmem:[%s2645_s1 + $0x268] sm:$0xff] }
 0x177   :  { %1515 = vmatmul.msk.f32.vlgmr.msra.gmra.mxu0 %vm532_vm13, %v1499_v5  ;;  %1516 = vmatmul.msk.f32.vlgmr.msra.gmra.mxu1 %vm532_vm13, %v1499_v5  ;;  %v156_v61 = vpop.xlane.xlu0 %155 }
 0x178   :  { %v2058_v22 = vpop.xlane.xlu2 %301  ;;  %v157_v23 = vcvt.f32.s32 %v156_v61  ;;  %720 = vmatpush.msra.mxu0 %v442_v49  ;;  %740 = vmatpush.msra.mxu1 %v443_v4 }
 0x179   :  { %vm303_vm3 = vcmp.eq.f32.partialorder %v1849_v3, %v2058_v22  ;;  %849 = vmatpush.msrb.mxu2 %v466_v55  ;;  %869 = vmatpush.msrb.mxu3 %v467_v60  ;;  %v465_v3 = vld [vmem:[%s2645_s1 + $0x1e8] sm:$0xff]  ;;  %v234_v55 = vshll.u32 %v233_v38, 16  ;;  %v278_v38 = vcvt.f32.s32 %v1897_v34  ;;  %v492_v34 = vld [vmem:[%s2645_s1 + $0x2c0] sm:$0xff] }
 0x17a   :  { %v160_v36 = vadd.s32 %v159_v21, %v157_v23  ;;  %v304_v58 = vsel %vm303_vm3, %v299_v0, inf  ;;  %721 = vmatpush.msra.mxu0 %v440_v7  ;;  %741 = vmatpush.msra.mxu1 %v441_v8  ;;  %v219_v7 = vshll.u32 %v218_v57, 16  ;;  %v263_v8 = vcvt.f32.s32 %v1884_v39  ;;  %v478_v21 = vld [vmem:[%s2645_s1 + $0x250] sm:$0xff]  ;;  %v479_v23 = vld [vmem:[%s2645_s1 + $0x258] sm:$0xff]  ;;  %v493_v57 = vld [vmem:[%s2645_s1 + $0x2c8] sm:$0xff] }
 0x17b   :  { %305 = vmin.xlane.f32.xlu0 %v304_v58  ;;  %850 = vmatpush.msrb.mxu2 %v464_v25  ;;  %v475_v39 = vld [vmem:[%s2645_s1 + $0x238] sm:$0xff]  ;;  %v477_v58 = vld [vmem:[%s2645_s1 + $0x248] sm:$0xff] }
 0x17c   :  { %vm358_vm4 = vcmp.eq.s32.totalorder %v1675_v27, %v160_v36  ;;  %722 = vmatpush.msra.mxu0 %v438_v35  ;;  %742 = vmatpush.msra.mxu1 %v439_v63  ;;  %v476_v36 = vld [vmem:[%s2645_s1 + $0x240] sm:$0xff] }
 0x17d   :  { %v2087_v47 = vpop.xlane.xlu1 %346  ;;  %v1501_v24 = vsel %vm358_vm4, 1.0, %v1569_v20  ;;  %870 = vmatpush.msrb.mxu3 %v465_v3  ;;  %851 = vmatpush.msrb.mxu2 %v462_v6  ;;  %v248_v3 = vcvt.f32.s32 %v1878_v32  ;;  %v264_v6 = vshll.u32 %v263_v8, 16  ;;  %v498_v32 = vld [vmem:[%s2645_s1 + $0x2f0] sm:$0xff] }
 0x17e   :  { %vm348_vm5 = vcmp.eq.f32.partialorder %v1861_v10, %v2087_v47  ;;  %723 = vmatpush.msra.mxu0 %v436_v18  ;;  %743 = vmatpush.msra.mxu1 %v437_v2  ;;  %v460_v10 = vld [vmem:[%s2645_s1 + $0x1c0] sm:$0xff] }
 0x17f   :  { %1519 = vmatmul.msk.f32.vlgmr.msrb.gmra.mxu0 %vm532_vm13, %v1501_v24  ;;  %1520 = vmatmul.msk.f32.vlgmr.msrb.gmra.mxu1 %vm532_vm13, %v1501_v24  ;;  %v349_v26 = vsel %vm348_vm5, %v344_v43, inf  ;;  %v2103_v9 = vpop.xlane.xlu0 %331  ;;  %v472_v2 = vld [vmem:[%s2645_s1 + $0x220] sm:$0xff]  ;;  %v499_v24 = vld [vmem:[%s2645_s1 + $0x2f8] sm:$0xff] }
 0x180   :  { %v201_v42 = vpop.xlane.xlu2 %200  ;;  %350 = vmin.xlane.f32.xlu1 %v349_v26  ;;  %vm333_vm0 = vcmp.eq.f32.partialorder %v1863_v11, %v2103_v9  ;;  %871 = vmatpush.msrb.mxu3 %v463_v14  ;;  %v188_v11 = vcvt.f32.s32 %v1865_v13  ;;  %v482_v13 = vld [vmem:[%s2645_s1 + $0x270] sm:$0xff]  ;;  %v471_v26 = vld [vmem:[%s2645_s1 + $0x218] sm:$0xff] }
 0x181   :  { %v202_v40 = vcvt.f32.s32 %v201_v42  ;;  %v334_v31 = vsel %vm333_vm0, %v329_v48, inf  ;;  %806 = vmatpush.msrb.mxu0 %v458_v17  ;;  %826 = vmatpush.msrb.mxu1 %v459_v29  ;;  %v470_v29 = vld [vmem:[%s2645_s1 + $0x210] sm:$0xff]  ;;  %v293_v48 = vcvt.f32.s32 %v1895_v33  ;;  %v249_v42 = vshll.u32 %v248_v3, 16 }
 0x182   :  { %335 = vmin.xlane.f32.xlu2 %v334_v31  ;;  %852 = vmatpush.msrb.mxu2 %v460_v10  ;;  %v189_v50 = vshll.u32 %v188_v11, 16  ;;  %v469_v31 = vld [vmem:[%s2645_s1 + $0x208] sm:$0xff]  ;;  %v502_v3 = vld [vmem:[%s2645_s1 + $0x310] sm:$0xff] }
 0x183   :  { %v205_v53 = vadd.s32 %v204_v52, %v202_v40  ;;  %872 = vmatpush.msrb.mxu3 %v461_v41  ;;  %807 = vmatpush.msrb.mxu0 %v456_v30  ;;  %v496_v41 = vld [vmem:[%s2645_s1 + $0x2e0] sm:$0xff]  ;;  %v497_v30 = vld [vmem:[%s2645_s1 + $0x2e8] sm:$0xff]  ;;  %v294_v11 = vshll.u32 %v293_v48, 16 }
 0x184   :  { %827 = vmatpush.msrb.mxu1 %v457_v28  ;;  %v468_v40 = vld [vmem:[%s2645_s1 + $0x200] sm:$0xff]  ;;  %v521_v48 = vld [vmem:[%s2645_s1 + $0x3a8] sm:$0xff] }
 0x185   :  { %vm361_vm6 = vcmp.eq.s32.totalorder %v1675_v27, %v205_v53  ;;  %v186_v46 = vpop.xlane.xlu1 %185  ;;  %808 = vmatpush.msrb.mxu0 %v454_v54  ;;  %v494_v53 = vld [vmem:[%s2645_s1 + $0x2d0] sm:$0xff] }
 0x186   :  { %v1504_v45 = vsel %vm361_vm6, 1.0, %v1569_v20  ;;  %v187_v62 = vcvt.f32.s32 %v186_v46  ;;  %828 = vmatpush.msrb.mxu1 %v455_v37  ;;  %v495_v37 = vld [vmem:[%s2645_s1 + $0x2d8] sm:$0xff] }
 0x187   :  { %1525 = vmatmul.msk.f32.vlgmr.msra.gmra.mxu2 %vm532_vm13, %v1504_v45  ;;  %1526 = vmatmul.msk.f32.vlgmr.msra.gmra.mxu3 %vm532_vm13, %v1504_v45 }
 0x188   :  { %v190_v49 = vadd.s32 %v189_v50, %v187_v62  ;;  %v231_v4 = vpop.xlane.xlu2 %230  ;;  %v216_v5 = vpop.xlane.xlu0 %215  ;;  %935 = vmatpush.msra.mxu2 %v482_v13  ;;  %955 = vmatpush.msra.mxu3 %v483_v56  ;;  %v490_v13 = vld [vmem:[%s2645_s1 + $0x2b0] sm:$0xff]  ;;  %v491_v56 = vld [vmem:[%s2645_s1 + $0x2b8] sm:$0xff]  ;;  %v488_v62 = vld [vmem:[%s2645_s1 + $0x2a0] sm:$0xff] }
 0x189   :  { %v232_v60 = vcvt.f32.s32 %v231_v4  ;;  %v217_v61 = vcvt.f32.s32 %v216_v5  ;;  %809 = vmatpush.msrb.mxu0 %v452_v59  ;;  %829 = vmatpush.msrb.mxu1 %v453_v51  ;;  %v489_v59 = vld [vmem:[%s2645_s1 + $0x2a8] sm:$0xff]  ;;  %v279_v51 = vshll.u32 %v278_v38, 16  ;;  %v514_v4 = vld [vmem:[%s2645_s1 + $0x370] sm:$0xff]  ;;  %v515_v5 = vld [vmem:[%s2645_s1 + $0x378] sm:$0xff] }
 0x18a   :  { %vm360_vm7 = vcmp.eq.s32.totalorder %v1675_v27, %v190_v49  ;;  %936 = vmatpush.msra.mxu2 %v480_v16  ;;  %956 = vmatpush.msra.mxu3 %v481_v1  ;;  %v486_v16 = vld [vmem:[%s2645_s1 + $0x290] sm:$0xff]  ;;  %v487_v1 = vld [vmem:[%s2645_s1 + $0x298] sm:$0xff] }
 0x18b   :  { %v1503_v0 = vsel %vm360_vm7, 1.0, %v1569_v20  ;;  %v235_v25 = vadd.s32 %v234_v55, %v232_v60  ;;  %v220_v35 = vadd.s32 %v219_v7, %v217_v61  ;;  %v484_v60 = vld [vmem:[%s2645_s1 + $0x280] sm:$0xff]  ;;  %v485_v61 = vld [vmem:[%s2645_s1 + $0x288] sm:$0xff] }
 0x18c   :  { %1523 = vmatmul.msk.f32.vlgmr.msra.gmra.mxu0 %vm532_vm13, %v1503_v0  ;;  %1524 = vmatmul.msk.f32.vlgmr.msra.gmra.mxu1 %vm532_vm13, %v1503_v0  ;;  %v510_v0 = vld [vmem:[%s2645_s1 + $0x350] sm:$0xff] }
 0x18d   :  { %vm363_vm8 = vcmp.eq.s32.totalorder %v1675_v27, %v235_v25  ;;  %v261_v63 = vpop.xlane.xlu1 %260  ;;  %937 = vmatpush.msra.mxu2 %v478_v21  ;;  %957 = vmatpush.msra.mxu3 %v479_v23  ;;  %vm362_vm9 = vcmp.eq.s32.totalorder %v1675_v27, %v220_v35  ;;  %v512_v21 = vld [vmem:[%s2645_s1 + $0x360] sm:$0xff]  ;;  %v513_v23 = vld [vmem:[%s2645_s1 + $0x368] sm:$0xff]  ;;  %v511_v25 = vld [vmem:[%s2645_s1 + $0x358] sm:$0xff] }
 0x18e   :  { %v1506_v12 = vsel %vm363_vm8, 1.0, %v1569_v20  ;;  %v262_v18 = vcvt.f32.s32 %v261_v63  ;;  %892 = vmatpush.msra.mxu0 %v474_v19  ;;  %912 = vmatpush.msra.mxu1 %v475_v39  ;;  %v1505_v52 = vsel %vm362_vm9, 1.0, %v1569_v20  ;;  %v508_v19 = vld [vmem:[%s2645_s1 + $0x340] sm:$0xff]  ;;  %v509_v39 = vld [vmem:[%s2645_s1 + $0x348] sm:$0xff]  ;;  %v506_v35 = vld [vmem:[%s2645_s1 + $0x330] sm:$0xff] }
 0x18f   :  { %1529 = vmatmul.msk.f32.vlgmr.msrb.gmra.mxu2 %vm532_vm13, %v1506_v12  ;;  %1530 = vmatmul.msk.f32.vlgmr.msrb.gmra.mxu3 %vm532_vm13, %v1506_v12  ;;  %v507_v63 = vld [vmem:[%s2645_s1 + $0x338] sm:$0xff]  ;;  %v530_v12 = vld [vmem:[%s2645_s1 + $0x3f0] sm:$0xff] }
 0x190   :  { %v265_v43 = vadd.s32 %v264_v6, %v262_v18  ;;  %v246_v14 = vpop.xlane.xlu2 %245  ;;  %v291_v17 = vpop.xlane.xlu0 %290  ;;  %938 = vmatpush.msra.mxu2 %v476_v36  ;;  %958 = vmatpush.msra.mxu3 %v477_v58  ;;  %v504_v36 = vld [vmem:[%s2645_s1 + $0x320] sm:$0xff]  ;;  %v505_v58 = vld [vmem:[%s2645_s1 + $0x328] sm:$0xff]  ;;  %v503_v6 = vld [vmem:[%s2645_s1 + $0x318] sm:$0xff] }
 0x191   :  { %v247_v10 = vcvt.f32.s32 %v246_v14  ;;  %893 = vmatpush.msra.mxu0 %v472_v2  ;;  %913 = vmatpush.msra.mxu1 %v473_v44  ;;  %v292_v33 = vcvt.f32.s32 %v291_v17  ;;  %v531_v18 = vld [vmem:[%s2645_s1 + $0x3f8] sm:$0xff]  ;;  %v500_v2 = vld [vmem:[%s2645_s1 + $0x300] sm:$0xff]  ;;  %v501_v44 = vld [vmem:[%s2645_s1 + $0x308] sm:$0xff] }
 0x192   :  { %1021 = vmatpush.msrb.mxu2 %v498_v32  ;;  %1041 = vmatpush.msrb.mxu3 %v499_v24  ;;  %vm365_vm10 = vcmp.eq.s32.totalorder %v1675_v27, %v265_v43  ;;  %v528_v32 = vld [vmem:[%s2645_s1 + $0x3e0] sm:$0xff]  ;;  %v529_v24 = vld [vmem:[%s2645_s1 + $0x3e8] sm:$0xff]  ;;  %v522_v43 = vld [vmem:[%s2645_s1 + $0x3b0] sm:$0xff] }
 0x193   :  { %894 = vmatpush.msra.mxu0 %v470_v29  ;;  %914 = vmatpush.msra.mxu1 %v471_v26  ;;  %v250_v28 = vadd.s32 %v249_v42, %v247_v10  ;;  %v1508_v46 = vsel %vm365_vm10, 1.0, %v1569_v20  ;;  %v295_v50 = vadd.s32 %v294_v11, %v292_v33  ;;  %v523_v14 = vld [vmem:[%s2645_s1 + $0x3b8] sm:$0xff]  ;;  %v526_v17 = vld [vmem:[%s2645_s1 + $0x3d0] sm:$0xff]  ;;  %v520_v26 = vld [vmem:[%s2645_s1 + $0x3a0] sm:$0xff] }
 0x194   :  { %1527 = vmatmul.msk.f32.vlgmr.msrb.gmra.mxu0 %vm532_vm13, %v1505_v52  ;;  %1528 = vmatmul.msk.f32.vlgmr.msrb.gmra.mxu1 %vm532_vm13, %v1505_v52  ;;  %v527_v29 = vld [vmem:[%s2645_s1 + $0x3d8] sm:$0xff]  ;;  %v524_v10 = vld [vmem:[%s2645_s1 + $0x3c0] sm:$0xff]  ;;  %v525_v42 = vld [vmem:[%s2645_s1 + $0x3c8] sm:$0xff] }
 0x195   :  { %v276_v54 = vpop.xlane.xlu1 %275  ;;  %1022 = vmatpush.msrb.mxu2 %v496_v41  ;;  %1042 = vmatpush.msrb.mxu3 %v497_v30  ;;  %vm364_vm11 = vcmp.eq.s32.totalorder %v1675_v27, %v250_v28  ;;  %vm367_vm12 = vcmp.eq.s32.totalorder %v1675_v27, %v295_v50  ;;  %v518_v41 = vld [vmem:[%s2645_s1 + $0x390] sm:$0xff]  ;;  %v519_v30 = vld [vmem:[%s2645_s1 + $0x398] sm:$0xff]  ;;  %v516_v52 = vld [vmem:[%s2645_s1 + $0x380] sm:$0xff]  ;;  %v338_v50 = vcvt.f32.s32 %v2103_v9 }
 0x196   :  { %895 = vmatpush.msra.mxu0 %v468_v40  ;;  %915 = vmatpush.msra.mxu1 %v469_v31  ;;  %v277_v45 = vcvt.f32.s32 %v276_v54  ;;  %v1507_v49 = vsel %vm364_vm11, 1.0, %v1569_v20  ;;  %v1510_v7 = vsel %vm367_vm12, 1.0, %v1569_v20  ;;  %v517_v33 = vld [vmem:[%s2645_s1 + $0x388] sm:$0xff]  ;;  %v323_v40 = vcvt.f32.s32 %v2014_v15 }
 0x197   :  { %1533 = vmatmul.msk.f32.vlgmr.msra.gmra.mxu2 %vm532_vm13, %v1508_v46  ;;  %1534 = vmatmul.msk.f32.vlgmr.msra.gmra.mxu3 %vm532_vm13, %v1508_v46 }
 0x198   :  { %1023 = vmatpush.msrb.mxu2 %v494_v53  ;;  %1043 = vmatpush.msrb.mxu3 %v495_v37  ;;  %v280_v55 = vadd.s32 %v279_v51, %v277_v45  ;;  %v324_v28 = vshll.u32 %v323_v40, 16  ;;  %v308_v53 = vcvt.f32.s32 %v2058_v22  ;;  %v1300_v40 = vld [vmem:[%s2646_s2 + $0x80] sm:$0xff] }
 0x199   :  { %978 = vmatpush.msrb.mxu0 %v490_v13  ;;  %998 = vmatpush.msrb.mxu1 %v491_v56  ;;  %v353_v56 = vcvt.f32.s32 %v2087_v47 }
 0x19a   :  { %1024 = vmatpush.msrb.mxu2 %v492_v34  ;;  %1044 = vmatpush.msrb.mxu3 %v493_v57  ;;  %vm366_vm14 = vcmp.eq.s32.totalorder %v1675_v27, %v280_v55  ;;  %v309_v46 = vshll.u32 %v308_v53, 16  ;;  %v1344_v55 = vld [vmem:[%s2646_s2 + $0x1e0] sm:$0xff]  ;;  %v1330_v53 = vld [vmem:[%s2646_s2 + $0x170] sm:$0xff] }
 0x19b   :  { %979 = vmatpush.msrb.mxu0 %v488_v62  ;;  %999 = vmatpush.msrb.mxu1 %v489_v59  ;;  %v1509_v8 = vsel %vm366_vm14, 1.0, %v1569_v20  ;;  %v354_v57 = vshll.u32 %v353_v56, 16  ;;  %v339_v59 = vshll.u32 %v338_v50, 16  ;;  %v1296_v56 = vld [vmem:[%s2646_s2 + $0x60] sm:$0xff]  ;;  %v1297_v50 = vld [vmem:[%s2646_s2 + $0x68] sm:$0xff] }
 0x19c   :  { %1531 = vmatmul.msk.f32.vlgmr.msra.gmra.mxu0 %vm532_vm13, %v1507_v49  ;;  %1532 = vmatmul.msk.f32.vlgmr.msra.gmra.mxu1 %vm532_vm13, %v1507_v49  ;;  %v1314_v49 = vld [vmem:[%s2646_s2 + $0xf0] sm:$0xff] }
 0x19d   :  { %980 = vmatpush.msrb.mxu0 %v486_v16  ;;  %1000 = vmatpush.msrb.mxu1 %v487_v1 }
 0x19e   :  { %1107 = vmatpush.msra.mxu2 %v514_v4  ;;  %1127 = vmatpush.msra.mxu3 %v515_v5  ;;  %v1346_v4 = vld [vmem:[%s2646_s2 + $0x1f0] sm:$0xff]  ;;  %v1312_v5 = vld [vmem:[%s2646_s2 + $0xe0] sm:$0xff] }
 0x19f   :  { %1537 = vmatmul.msk.f32.vlgmr.msrb.gmra.mxu2 %vm532_vm13, %v1510_v7  ;;  %1538 = vmatmul.msk.f32.vlgmr.msrb.gmra.mxu3 %vm532_vm13, %v1510_v7  ;;  %v1310_v7 = vld [vmem:[%s2646_s2 + $0xd0] sm:$0xff] }
 0x1a0   :  { %981 = vmatpush.msrb.mxu0 %v484_v60  ;;  %1001 = vmatpush.msrb.mxu1 %v485_v61  ;;  %v1313_v60 = vld [vmem:[%s2646_s2 + $0xe8] sm:$0xff] }
 0x1a1   :  { %1108 = vmatpush.msra.mxu2 %v512_v21  ;;  %1128 = vmatpush.msra.mxu3 %v513_v23  ;;  %v1345_v61 = vld [vmem:[%s2646_s2 + $0x1e8] sm:$0xff]  ;;  %v1311_v21 = vld [vmem:[%s2646_s2 + $0xd8] sm:$0xff] }
 0x1a2   :  { %1064 = vmatpush.msra.mxu0 %v506_v35  ;;  %1084 = vmatpush.msra.mxu1 %v507_v63  ;;  %v1343_v23 = vld [vmem:[%s2646_s2 + $0x1d8] sm:$0xff]  ;;  %v1306_v35 = vld [vmem:[%s2646_s2 + $0xb0] sm:$0xff] }
 0x1a3   :  { %1109 = vmatpush.msra.mxu2 %v510_v0  ;;  %1129 = vmatpush.msra.mxu3 %v511_v25  ;;  %v1308_v0 = vld [vmem:[%s2646_s2 + $0xc0] sm:$0xff]  ;;  %v1338_v63 = vld [vmem:[%s2646_s2 + $0x1b0] sm:$0xff] }
 0x1a4   :  { %1535 = vmatmul.msk.f32.vlgmr.msrb.gmra.mxu0 %vm532_vm13, %v1509_v8  ;;  %1536 = vmatmul.msk.f32.vlgmr.msrb.gmra.mxu1 %vm532_vm13, %v1509_v8  ;;  %v1342_v8 = vld [vmem:[%s2646_s2 + $0x1d0] sm:$0xff]  ;;  %v1340_v25 = vld [vmem:[%s2646_s2 + $0x1c0] sm:$0xff] }
 0x1a5   :  { %1110 = vmatpush.msra.mxu2 %v508_v19  ;;  %1130 = vmatpush.msra.mxu3 %v509_v39  ;;  %v1309_v19 = vld [vmem:[%s2646_s2 + $0xc8] sm:$0xff] }
 0x1a6   :  { %1065 = vmatpush.msra.mxu0 %v504_v36  ;;  %1085 = vmatpush.msra.mxu1 %v505_v58  ;;  %v1341_v39 = vld [vmem:[%s2646_s2 + $0x1c8] sm:$0xff]  ;;  %v1307_v36 = vld [vmem:[%s2646_s2 + $0xb8] sm:$0xff] }
 0x1a7   :  { %1193 = vmatpush.msrb.mxu2 %v530_v12  ;;  %1213 = vmatpush.msrb.mxu3 %v531_v18  ;;  %v1339_v58 = vld [vmem:[%s2646_s2 + $0x1b8] sm:$0xff]  ;;  %v1305_v12 = vld [vmem:[%s2646_s2 + $0xa8] sm:$0xff] }
 0x1a8   :  { %1066 = vmatpush.msra.mxu0 %v502_v3  ;;  %1086 = vmatpush.msra.mxu1 %v503_v6  ;;  %v1304_v3 = vld [vmem:[%s2646_s2 + $0xa0] sm:$0xff]  ;;  %v1337_v18 = vld [vmem:[%s2646_s2 + $0x1a8] sm:$0xff] }
 0x1a9   :  { %1194 = vmatpush.msrb.mxu2 %v528_v32  ;;  %1214 = vmatpush.msrb.mxu3 %v529_v24  ;;  %v1336_v6 = vld [vmem:[%s2646_s2 + $0x1a0] sm:$0xff]  ;;  %v1303_v32 = vld [vmem:[%s2646_s2 + $0x98] sm:$0xff] }
 0x1aa   :  { %1067 = vmatpush.msra.mxu0 %v500_v2  ;;  %1087 = vmatpush.msra.mxu1 %v501_v44  ;;  %v1302_v2 = vld [vmem:[%s2646_s2 + $0x90] sm:$0xff]  ;;  %v1335_v24 = vld [vmem:[%s2646_s2 + $0x198] sm:$0xff] }
 0x1ab   :  { %1195 = vmatpush.msrb.mxu2 %v526_v17  ;;  %1215 = vmatpush.msrb.mxu3 %v527_v29  ;;  %v1334_v44 = vld [vmem:[%s2646_s2 + $0x190] sm:$0xff] }
 0x1ac   :  { %1150 = vmatpush.msrb.mxu0 %v522_v43  ;;  %1170 = vmatpush.msrb.mxu1 %v523_v14 }
 0x1ad   :  { %1196 = vmatpush.msrb.mxu2 %v524_v10  ;;  %1216 = vmatpush.msrb.mxu3 %v525_v42 }
 0x1ae   :  { %1151 = vmatpush.msrb.mxu0 %v520_v26  ;;  %1171 = vmatpush.msrb.mxu1 %v521_v48 }
 0x1b0   :  { %1152 = vmatpush.msrb.mxu0 %v518_v41  ;;  %1172 = vmatpush.msrb.mxu1 %v519_v30 }
 0x1b2   :  { %1153 = vmatpush.msrb.mxu0 %v516_v52  ;;  %1173 = vmatpush.msrb.mxu1 %v517_v33 }
 0x1e5   :  { %v321_v31 = vpop.xlane.xlu2 %320 }
 0x1e6   :  { %v322_v11 = vcvt.f32.s32 %v321_v31  ;;  %v1332_v31 = vld [vmem:[%s2646_s2 + $0x180] sm:$0xff] }
 0x1e8   :  { %v325_v54 = vadd.s32 %v324_v28, %v322_v11  ;;  %v1301_v28 = vld [vmem:[%s2646_s2 + $0x88] sm:$0xff] }
 0x1e9   :  { %v1333_v11 = vld [vmem:[%s2646_s2 + $0x188] sm:$0xff] }
 0x1ea   :  { %vm369_vm15 = vcmp.eq.s32.totalorder %v1675_v27, %v325_v54  ;;  %v1298_v54 = vld [vmem:[%s2646_s2 + $0x70] sm:$0xff] }
 0x1eb   :  { %v1512_v37 = vsel %vm369_vm15, 1.0, %v1569_v20 }
 0x1ec   :  { %1541 = vmatmul.msk.f32.vlgmr.msra.gmra.mxu2 %vm532_vm13, %v1512_v37  ;;  %1542 = vmatmul.msk.f32.vlgmr.msra.gmra.mxu3 %vm532_vm13, %v1512_v37  ;;  %v1299_v37 = vld [vmem:[%s2646_s2 + $0x78] sm:$0xff] }
 0x1ee   :  { %v306_v38 = vpop.xlane.xlu0 %305 }
 0x1ef   :  { %v307_v13 = vcvt.f32.s32 %v306_v38  ;;  %v1331_v38 = vld [vmem:[%s2646_s2 + $0x178] sm:$0xff] }
 0x1f1   :  { %v310_v15 = vadd.s32 %v309_v46, %v307_v13  ;;  %v596_v17 = vpop.f32.mrf.mxu2  ;;  %v616_v29 = vpop.f32.mrf.mxu3 }
 0x1f3   :  { %vm368_vm1 = vcmp.eq.s32.totalorder %v1675_v27, %v310_v15  ;;  %v351_v34 = vpop.xlane.xlu1 %350  ;;  %v1328_v15 = vld [vmem:[%s2646_s2 + $0x160] sm:$0xff] }
 0x1f4   :  { %v1511_v22 = vsel %vm368_vm1, 1.0, %v1569_v20  ;;  %v352_v45 = vcvt.f32.s32 %v351_v34  ;;  %v553_v43 = vpop.f32.mrf.mxu0  ;;  %v573_v14 = vpop.f32.mrf.mxu1 }
 0x1f5   :  { %1539 = vmatmul.msk.f32.vlgmr.msra.gmra.mxu0 %vm532_vm13, %v1511_v22  ;;  %1540 = vmatmul.msk.f32.vlgmr.msra.gmra.mxu1 %vm532_vm13, %v1511_v22  ;;  %v336_v62 = vpop.xlane.xlu2 %335  ;;  %v1294_v22 = vld [vmem:[%s2646_s2 + $0x50] sm:$0xff] }
 0x1f6   :  { %v355_v51 = vadd.s32 %v354_v57, %v352_v45  ;;  %v337_v16 = vcvt.f32.s32 %v336_v62  ;;  %1348 = vmatpush.msra.mxu0 %v1314_v49  ;;  %1368 = vmatpush.msra.mxu1 %v1346_v4  ;;  %v1329_v57 = vld [vmem:[%s2646_s2 + $0x168] sm:$0xff]  ;;  %v1326_v45 = vld [vmem:[%s2646_s2 + $0x150] sm:$0xff] }
 0x1f8   :  { %vm371_vm2 = vcmp.eq.s32.totalorder %v1675_v27, %v355_v51  ;;  %v340_v47 = vadd.s32 %v339_v59, %v337_v16  ;;  %1349 = vmatpush.msra.mxu0 %v1312_v5  ;;  %1369 = vmatpush.msra.mxu1 %v1344_v55  ;;  %v1295_v16 = vld [vmem:[%s2646_s2 + $0x58] sm:$0xff]  ;;  %v1293_v5 = vld [vmem:[%s2646_s2 + $0x48] sm:$0xff] }
 0x1f9   :  { %v1514_v9 = vsel %vm371_vm2, 1.0, %v1569_v20  ;;  %v2470_v10 = vpop.f32.mrf.mxu2  ;;  %v2472_v42 = vpop.f32.mrf.mxu3  ;;  %v1325_v55 = vld [vmem:[%s2646_s2 + $0x148] sm:$0xff] }
 0x1fa   :  { %vm370_vm3 = vcmp.eq.s32.totalorder %v1675_v27, %v340_v47  ;;  %1545 = vmatmul.msk.f32.vlgmr.msrb.gmra.mxu2 %vm532_vm13, %v1514_v9  ;;  %1546 = vmatmul.msk.f32.vlgmr.msrb.gmra.mxu3 %vm532_vm13, %v1514_v9  ;;  %v1315_v27 = vld [vmem:[%s2646_s2 + $0xf8] sm:$0xff]  ;;  %v1292_v9 = vld [vmem:[%s2646_s2 + $0x40] sm:$0xff] }
 0x1fb   :  { %v1513_v1 = vsel %vm370_vm3, 1.0, %v1569_v20  ;;  %v1347_v20 = vld [vmem:[%s2646_s2 + $0x1f8] sm:$0xff]  ;;  %1388 = vmatpush.msra.mxu2 %v1315_v27  ;;  %1350 = vmatpush.msra.mxu0 %v1310_v7 }
 0x1fc   :  { %1408 = vmatpush.msra.mxu3 %v1347_v20  ;;  %1370 = vmatpush.msra.mxu1 %v1342_v8  ;;  %v639_v26 = vpop.f32.mrf.mxu0  ;;  %v659_v48 = vpop.f32.mrf.mxu1  ;;  %v1327_v47 = vld [vmem:[%s2646_s2 + $0x158] sm:$0xff]  ;;  %v1324_v20 = vld [vmem:[%s2646_s2 + $0x140] sm:$0xff] }
 0x1fd   :  { %1543 = vmatmul.msk.f32.vlgmr.msrb.gmra.mxu0 %vm532_vm13, %v1513_v1  ;;  %1544 = vmatmul.msk.f32.vlgmr.msrb.gmra.mxu1 %vm532_vm13, %v1513_v1  ;;  %vm1221_vm13 = vcmask 1041408  }
 0x1fe   :  { %1389 = vmatpush.msra.mxu2 %v1313_v60  ;;  %1409 = vmatpush.msra.mxu3 %v1345_v61  ;;  %v1222_v46 = vsel %vm1221_vm13, %v553_v43, 0.0  ;;  %v1253_v13 = vsel %vm1221_vm13, %v573_v14, 0.0  ;;  %v1223_v34 = vsel %vm1221_vm13, %v596_v17, 0.0  ;;  %v1254_v62 = vsel %vm1221_vm13, %v616_v29, 0.0  ;;  %v1319_v14 = vld [vmem:[%s2646_s2 + $0x118] sm:$0xff] }
 0x1ff   :  { %1351 = vmatpush.msra.mxu0 %v1308_v0  ;;  %1371 = vmatpush.msra.mxu1 %v1340_v25  ;;  %v1225_v59 = vsel %vm1221_vm13, %v639_v26, 0.0  ;;  %v1256_v51 = vsel %vm1221_vm13, %v659_v48, 0.0  ;;  %v1224_v1 = vadd.f32 %v1223_v34, %v1222_v46  ;;  %v1255_v49 = vadd.f32 %v1254_v62, %v1253_v13  ;;  %v1291_v0 = vld [vmem:[%s2646_s2 + $0x38] sm:$0xff]  ;;  %v1284_v26 = vld [vmem:[%s2646_s2] sm:$0xff] }
 0x200   :  { %1390 = vmatpush.msra.mxu2 %v1311_v21  ;;  %1410 = vmatpush.msra.mxu3 %v1343_v23  ;;  %v1290_v21 = vld [vmem:[%s2646_s2 + $0x30] sm:$0xff]  ;;  %v1227_v25 = vsel %vm1221_vm13, %v2470_v10, 0.0  ;;  %v1316_v48 = vld [vmem:[%s2646_s2 + $0x100] sm:$0xff]  ;;  %v1285_v10 = vld [vmem:[%s2646_s2 + $0x8] sm:$0xff] }
 0x201   :  { %1352 = vmatpush.msra.mxu0 %v1306_v35  ;;  %1372 = vmatpush.msra.mxu1 %v1338_v63  ;;  %v1226_v60 = vadd.f32 %v1225_v59, %v1224_v1  ;;  %v1257_v61 = vadd.f32 %v1256_v51, %v1255_v49  ;;  %v1322_v23 = vld [vmem:[%s2646_s2 + $0x130] sm:$0xff] }
 0x202   :  { %1391 = vmatpush.msra.mxu2 %v1309_v19  ;;  %1411 = vmatpush.msra.mxu3 %v1341_v39  ;;  %v1323_v19 = vld [vmem:[%s2646_s2 + $0x138] sm:$0xff]  ;;  %v1258_v39 = vsel %vm1221_vm13, %v2472_v42, 0.0 }
 0x203   :  { %1353 = vmatpush.msra.mxu0 %v1304_v3  ;;  %1373 = vmatpush.msra.mxu1 %v1336_v6  ;;  %v1289_v3 = vld [vmem:[%s2646_s2 + $0x28] sm:$0xff]  ;;  %v1228_v6 = vadd.f32 %v1227_v25, %v1226_v60 }
 0x204   :  { %1392 = vmatpush.msra.mxu2 %v1307_v36  ;;  %1412 = vmatpush.msra.mxu3 %v1339_v58  ;;  %v1288_v36 = vld [vmem:[%s2646_s2 + $0x20] sm:$0xff] }
 0x205   :  { %1354 = vmatpush.msra.mxu0 %v1302_v2  ;;  %1374 = vmatpush.msra.mxu1 %v1334_v44  ;;  %v1320_v58 = vld [vmem:[%s2646_s2 + $0x120] sm:$0xff]  ;;  %v1286_v2 = vld [vmem:[%s2646_s2 + $0x10] sm:$0xff] }
 0x206   :  { %1393 = vmatpush.msra.mxu2 %v1305_v12  ;;  %1413 = vmatpush.msra.mxu3 %v1337_v18  ;;  %v1259_v12 = vadd.f32 %v1258_v39, %v1257_v61  ;;  %v1321_v18 = vld [vmem:[%s2646_s2 + $0x128] sm:$0xff]  ;;  %v1318_v44 = vld [vmem:[%s2646_s2 + $0x110] sm:$0xff] }
 0x207   :  { %1355 = vmatpush.msra.mxu0 %v1300_v40  ;;  %1375 = vmatpush.msra.mxu1 %v1332_v31 }
 0x208   :  { %1394 = vmatpush.msra.mxu2 %v1303_v32  ;;  %1414 = vmatpush.msra.mxu3 %v1335_v24  ;;  %v1287_v32 = vld [vmem:[%s2646_s2 + $0x18] sm:$0xff] }
 0x209   :  { %v2474_v41 = vpop.f32.mrf.mxu0  ;;  %v2476_v30 = vpop.f32.mrf.mxu1  ;;  %1356 = vmatpush.msra.mxu0 %v1298_v54  ;;  %1376 = vmatpush.msra.mxu1 %v1330_v53 }
 0x20a   :  { %v2478_v52 = vpop.f32.mrf.mxu2  ;;  %v2480_v33 = vpop.f32.mrf.mxu3  ;;  %1395 = vmatpush.msra.mxu2 %v1301_v28  ;;  %1415 = vmatpush.msra.mxu3 %v1333_v11  ;;  %v1229_v35 = vsel %vm1221_vm13, %v2474_v41, 0.0  ;;  %v1260_v63 = vsel %vm1221_vm13, %v2476_v30, 0.0  ;;  %v1317_v30 = vld [vmem:[%s2646_s2 + $0x108] sm:$0xff] }
 0x20b   :  { %1357 = vmatpush.msra.mxu0 %v1296_v56  ;;  %1377 = vmatpush.msra.mxu1 %v1328_v15  ;;  %v1230_v24 = vadd.f32 %v1229_v35, %v1228_v6  ;;  %v1261_v43 = vadd.f32 %v1260_v63, %v1259_v12  ;;  %v1231_v17 = vsel %vm1221_vm13, %v2478_v52, 0.0  ;;  %v1262_v29 = vsel %vm1221_vm13, %v2480_v33, 0.0 }
 0x20c   :  { %1396 = vmatpush.msra.mxu2 %v1299_v37  ;;  %1416 = vmatpush.msra.mxu3 %v1331_v38 }
 0x20d   :  { %1358 = vmatpush.msra.mxu0 %v1294_v22  ;;  %1378 = vmatpush.msra.mxu1 %v1326_v45  ;;  %v1232_v40 = vadd.f32 %v1231_v17, %v1230_v24  ;;  %v1263_v31 = vadd.f32 %v1262_v29, %v1261_v43  ;;  %v1428_v17 = vld [vmem:[%s2647_s3] sm:$0x3] }
 0x20e   :  { %1397 = vmatpush.msra.mxu2 %v1297_v50  ;;  %1417 = vmatpush.msra.mxu3 %v1329_v57  ;;  %v1430_v29 = vperm.slane %v1428_v17, 0 }
 0x20f   :  { %1359 = vmatpush.msra.mxu0 %v1292_v9  ;;  %1379 = vmatpush.msra.mxu1 %v1324_v20 }
 0x210   :  { %1398 = vmatpush.msra.mxu2 %v1295_v16  ;;  %1418 = vmatpush.msra.mxu3 %v1327_v47 }
 0x211   :  { %v811_v4 = vpop.f32.mrf.mxu0  ;;  %v831_v27 = vpop.f32.mrf.mxu1  ;;  %1360 = vmatpush.msra.mxu0 %v1290_v21  ;;  %1380 = vmatpush.msra.mxu1 %v1322_v23 }
 0x212   :  { %v854_v7 = vpop.f32.mrf.mxu2  ;;  %v874_v8 = vpop.f32.mrf.mxu3  ;;  %1399 = vmatpush.msra.mxu2 %v1293_v5  ;;  %1419 = vmatpush.msra.mxu3 %v1325_v55  ;;  %v1233_v52 = vsel %vm1221_vm13, %v811_v4, 0.0  ;;  %v1264_v33 = vsel %vm1221_vm13, %v831_v27, 0.0 }
 0x213   :  { %1361 = vmatpush.msra.mxu0 %v1288_v36  ;;  %1381 = vmatpush.msra.mxu1 %v1320_v58  ;;  %v1234_v54 = vadd.f32 %v1233_v52, %v1232_v40  ;;  %v1265_v53 = vadd.f32 %v1264_v33, %v1263_v31  ;;  %v1235_v37 = vsel %vm1221_vm13, %v854_v7, 0.0  ;;  %v1266_v38 = vsel %vm1221_vm13, %v874_v8, 0.0 }
 0x214   :  { %1400 = vmatpush.msra.mxu2 %v1291_v0  ;;  %1420 = vmatpush.msra.mxu3 %v1323_v19  ;;  %v1431_v52 = vperm.slane %v1428_v17, 1 }
 0x215   :  { %1362 = vmatpush.msra.mxu0 %v1286_v2  ;;  %1382 = vmatpush.msra.mxu1 %v1318_v44  ;;  %v1236_v56 = vadd.f32 %v1235_v37, %v1234_v54  ;;  %v1267_v15 = vadd.f32 %v1266_v38, %v1265_v53  ;;  %v1570_v38 = vmov 20.0  }
 0x216   :  { %1401 = vmatpush.msra.mxu2 %v1289_v3  ;;  %1421 = vmatpush.msra.mxu3 %v1321_v18  ;;  %1551 = vrcp.f32 %v1570_v38 }
 0x217   :  { %1363 = vmatpush.msra.mxu0 %v1284_v26  ;;  %1383 = vmatpush.msra.mxu1 %v1316_v48 }
 0x218   :  { %1402 = vmatpush.msra.mxu2 %v1287_v32  ;;  %1422 = vmatpush.msra.mxu3 %v1319_v14 }
 0x219   :  { %v897_v42 = vpop.f32.mrf.mxu0  ;;  %v917_v41 = vpop.f32.mrf.mxu1 }
 0x21a   :  { %1403 = vmatpush.msra.mxu2 %v1285_v10  ;;  %1423 = vmatpush.msra.mxu3 %v1317_v30  ;;  %v940_v28 = vpop.f32.mrf.mxu2  ;;  %v960_v11 = vpop.f32.mrf.mxu3  ;;  %v1237_v46 = vsel %vm1221_vm13, %v897_v42, 0.0  ;;  %v1268_v13 = vsel %vm1221_vm13, %v917_v41, 0.0 }
 0x21b   :  { %v1238_v50 = vadd.f32 %v1237_v46, %v1236_v56  ;;  %v1269_v34 = vadd.f32 %v1268_v13, %v1267_v15  ;;  %v1239_v45 = vsel %vm1221_vm13, %v940_v28, 0.0  ;;  %v1270_v62 = vsel %vm1221_vm13, %v960_v11, 0.0 }
 0x21d   :  { %v1240_v9 = vadd.f32 %v1239_v45, %v1238_v50  ;;  %v1271_v1 = vadd.f32 %v1270_v62, %v1269_v34 }
 0x221   :  { %v983_v57 = vpop.f32.mrf.mxu0  ;;  %v1003_v22 = vpop.f32.mrf.mxu1 }
 0x222   :  { %v1241_v59 = vsel %vm1221_vm13, %v983_v57, 0.0  ;;  %v1272_v51 = vsel %vm1221_vm13, %v1003_v22, 0.0  ;;  %v1026_v16 = vpop.f32.mrf.mxu2  ;;  %v1046_v47 = vpop.f32.mrf.mxu3 }
 0x223   :  { %v1242_v49 = vadd.f32 %v1241_v59, %v1240_v9  ;;  %v1273_v4 = vadd.f32 %v1272_v51, %v1271_v1  ;;  %v1243_v27 = vsel %vm1221_vm13, %v1026_v16, 0.0  ;;  %v1274_v20 = vsel %vm1221_vm13, %v1046_v47, 0.0  ;;  %v1552_v22 = vpop.eup %1551 }
 0x224   :  { %v1451_v51 = vmul.f32 20.0, %v1552_v22  ;;  %vm1455_vm4 = vweird.f32 %v1552_v22 }
 0x225   :  { %v1244_v7 = vadd.f32 %v1243_v27, %v1242_v49  ;;  %v1275_v8 = vadd.f32 %v1274_v20, %v1273_v4 }
 0x226   :  { %v1452_v1 = vsub.f32 1.0, %v1451_v51 }
 0x228   :  { %v1453_v27 = vmul.f32 %v1552_v22, %v1452_v1 }
 0x26f   :  { %v1112_v21 = vpop.f32.mrf.mxu2  ;;  %v1132_v23 = vpop.f32.mrf.mxu3 }
 0x270   :  { %v1247_v19 = vsel %vm1221_vm13, %v1112_v21, 0.0  ;;  %v1278_v39 = vsel %vm1221_vm13, %v1132_v23, 0.0 }
 0x272   :  { %v1069_v5 = vpop.f32.mrf.mxu0  ;;  %v1089_v55 = vpop.f32.mrf.mxu1 }
 0x273   :  { %v1245_v60 = vsel %vm1221_vm13, %v1069_v5, 0.0  ;;  %v1276_v61 = vsel %vm1221_vm13, %v1089_v55, 0.0 }
 0x274   :  { %v1246_v0 = vadd.f32 %v1245_v60, %v1244_v7  ;;  %v1277_v25 = vadd.f32 %v1276_v61, %v1275_v8  ;;  %v1454_v60 = vadd.f32 %v1552_v22, %v1453_v27 }
 0x276   :  { %v1248_v63 = vadd.f32 %v1247_v19, %v1246_v0  ;;  %v1279_v58 = vadd.f32 %v1278_v39, %v1277_v25  ;;  %v1456_v0 = vsel %vm1455_vm4, %v1552_v22, %v1454_v60 }
 0x27a   :  { %v1155_v35 = vpop.f32.mrf.mxu0  ;;  %v1175_v36 = vpop.f32.mrf.mxu1 }
 0x27b   :  { %v1249_v3 = vsel %vm1221_vm13, %v1155_v35, 0.0  ;;  %v1280_v6 = vsel %vm1221_vm13, %v1175_v36, 0.0 }
 0x27c   :  { %v1250_v12 = vadd.f32 %v1249_v3, %v1248_v63  ;;  %v1281_v18 = vadd.f32 %v1280_v6, %v1279_v58 }
 0x27d   :  { %v1198_v2 = vpop.f32.mrf.mxu2  ;;  %v1218_v44 = vpop.f32.mrf.mxu3 }
 0x27e   :  { %v1251_v32 = vsel %vm1221_vm13, %v1198_v2, 0.0  ;;  %v1282_v24 = vsel %vm1221_vm13, %v1218_v44, 0.0 }
 0x27f   :  { %v1252_v43 = vadd.f32 %v1251_v32, %v1250_v12  ;;  %v1283_v14 = vadd.f32 %v1282_v24, %v1281_v18 }
 0x281   :  { %1364 = vmatmul.f32.vlgmr.msra.gmra.mxu0 %v1252_v43  ;;  %1384 = vmatmul.f32.vlgmr.msra.gmra.mxu1 %v1283_v14 }
 0x282   :  { %1404 = vmatmul.f32.vlgmr.msra.gmra.mxu2 %v1252_v43  ;;  %1424 = vmatmul.f32.vlgmr.msra.gmra.mxu3 %v1283_v14 }
 0x2fe   :  { %v1365_v26 = vpop.f32.mrf.mxu0  ;;  %v1385_v48 = vpop.f32.mrf.mxu1 }
 0x2ff   :  { %v1386_v10 = vadd.f32 %v1385_v48, %v1365_v26 }
 0x301   :  { %v2631_v42 = vsub.f32 %v1386_v10, %v1430_v29 }
 0x303   :  { %v2634_v41 = vmul.f32 20.0, %v2631_v42  ;;  %v1547_v30 = vadd.f32 -1.0, %v2631_v42 }
 0x305   :  { %v1438_v33 = vmin.f32 %v2634_v41, 20.0  ;;  %v1467_v40 = vmul.f32 20.0, %v1547_v30  ;;  %v1405_v31 = vpop.f32.mrf.mxu2  ;;  %v1425_v28 = vpop.f32.mrf.mxu3  ;;  %vm1459_vm7 = vcmp.gt.f32.partialorder %v2634_v41, 20.0 }
 0x306   :  { %v1426_v11 = vadd.f32 %v1425_v28, %v1405_v31 }
 0x307   :  { %v1440_v54 = vmul.f32 1.442695, %v1438_v33  ;;  %v1469_v53 = vmin.f32 %v1467_v40, 20.0  ;;  %vm1483_vm5 = vcmp.gt.f32.partialorder %v1467_v40, 20.0 }
 0x308   :  { %v1435_v37 = vsub.f32 %v1426_v11, %v1431_v52 }
 0x309   :  { %v1471_v46 = vmul.f32 1.442695, %v1469_v53  ;;  %1553 = vpow2.f32 %v1440_v54 }
 0x30a   :  { %v1437_v13 = vmul.f32 20.0, %v1435_v37  ;;  %v1548_v56 = vadd.f32 -1.0, %v1435_v37 }
 0x30b   :  { %1555 = vpow2.f32 %v1471_v46 }
 0x30c   :  { %v1439_v15 = vmin.f32 %v1437_v13, 20.0  ;;  %v1468_v50 = vmul.f32 20.0, %v1548_v56  ;;  %vm1460_vm0 = vcmp.gt.f32.partialorder %v1437_v13, 20.0 }
 0x30e   :  { %v1442_v34 = vmul.f32 1.442695, %v1439_v15  ;;  %v1470_v57 = vmin.f32 %v1468_v50, 20.0  ;;  %vm1484_vm6 = vcmp.gt.f32.partialorder %v1468_v50, 20.0 }
 0x30f   :  { %v1554_v45 = vpop.eup %1553 }
 0x310   :  { %1557 = vpow2.f32 %v1442_v34  ;;  %v1473_v62 = vmul.f32 1.442695, %v1470_v57  ;;  %v1444_v47 = vadd.f32 1.0, %v1554_v45 }
 0x311   :  { %v1556_v59 = vpop.eup %1555 }
 0x312   :  { %v1475_v16 = vadd.f32 1.0, %v1556_v59  ;;  %1559 = vpow2.f32 %v1473_v62 }
 0x314   :  { %1561 = vlog2.f32 %v1475_v16 }
 0x315   :  { %1563 = vlog2.f32 %v1444_v47 }
 0x316   :  { %v1558_v9 = vpop.eup %1557 }
 0x317   :  { %v1445_v49 = vadd.f32 1.0, %v1558_v9 }
 0x318   :  { %v1560_v4 = vpop.eup %1559 }
 0x319   :  { %1565 = vlog2.f32 %v1445_v49  ;;  %v1476_v20 = vadd.f32 1.0, %v1560_v4 }
 0x31a   :  { %v1562_v5 = vpop.eup %1561 }
 0x31b   :  { %1567 = vlog2.f32 %v1476_v20  ;;  %v1564_v55 = vpop.eup %1563  ;;  %v1478_v7 = vmul.f32 0.6931472, %v1562_v5 }
 0x31c   :  { %v1447_v21 = vmul.f32 0.6931472, %v1564_v55 }
 0x31d   :  { %v1481_v25 = vmul.f32 %v1478_v7, %v1456_v0 }
 0x31e   :  { %v1457_v35 = vmul.f32 %v1456_v0, %v1447_v21 }
 0x31f   :  { %v1566_v61 = vpop.eup %1565  ;;  %v1485_v36 = vsel %vm1483_vm5, %v1547_v30, %v1481_v25 }
 0x320   :  { %v1449_v8 = vmul.f32 0.6931472, %v1566_v61  ;;  %v1461_v12 = vsel %vm1459_vm7, %v2631_v42, %v1457_v35 }
 0x321   :  { %v1568_v23 = vpop.eup %1567  ;;  %v1487_v18 = vsub.f32 %v1461_v12, %v1485_v36 }
 0x322   :  { %v1458_v19 = vmul.f32 %v1456_v0, %v1449_v8  ;;  %v1480_v39 = vmul.f32 0.6931472, %v1568_v23 }
 0x324   :  { %v1482_v63 = vmul.f32 %v1480_v39, %v1456_v0  ;;  %v1462_v58 = vsel %vm1460_vm0, %v1435_v37, %v1458_v19 }
 0x326   :  { %v1486_v3 = vsel %vm1484_vm6, %v1548_v56, %v1482_v63 }
 0x327   :  { %v1488_v6 = vsub.f32 %v1462_v58, %v1486_v3 }
 0x329   :  { %v1491_v2 = vrot.slane %v1488_v6, 6 }
 0x32b   :  { %v1492_v44 = vsel %vm1221_vm13, %v1487_v18, %v1491_v2 }
 0x32c   :  { %1494 = vst [vmem:[%s2648_s4] sm:$0xf] %v1492_v44 }

</bundles_post_ra>
